<compile_context>
chip_gen: v7x
topology: tpu7x:2x2x1
jax: 0.10.0
libtpu: 0.0.40
codegen_flags: <defaults>
</compile_context>

<pallas_src>
import jax
import jax.numpy as jnp
from jax.experimental import pallas as pl
from jax.experimental.pallas import tpu as pltpu

OUT_LANES = 128  # lane-dense fused (logits | value) output width


def _ppo_heads_kernel(x_ref,
                      w1_ref, b1_ref,
                      wp2_ref, bp2_ref, wp3_ref, bp3_ref,
                      wv2_ref, bv2_ref, wv3_ref, bv3_ref,
                      w4p_ref, w4v_ref, b4_ref,
                      out_ref):
    """One batch tile of the fused policy/value MLP heads."""
    H = wp2_ref.shape[0]
    x = x_ref[...]                                                  # bf16 [TB, D]

    # ---- fused layer 1 (policy || value): single MXU pass over [D, 2H] ----
    h1 = jnp.dot(x, w1_ref[...], preferred_element_type=jnp.float32) + b1_ref[...]
    h1 = jnp.maximum(h1, 0.0)
    h1p = h1[:, :H].astype(jnp.bfloat16)
    h1v = h1[:, H:].astype(jnp.bfloat16)

    # ---- policy trunk (layers 2, 3) ----
    h2p = jnp.maximum(
        jnp.dot(h1p, wp2_ref[...], preferred_element_type=jnp.float32) + bp2_ref[...], 0.0)
    h3p = jnp.maximum(
        jnp.dot(h2p.astype(jnp.bfloat16), wp3_ref[...],
                preferred_element_type=jnp.float32) + bp3_ref[...], 0.0)

    # ---- value trunk (layers 2, 3) ----
    h2v = jnp.maximum(
        jnp.dot(h1v, wv2_ref[...], preferred_element_type=jnp.float32) + bv2_ref[...], 0.0)
    h3v = jnp.maximum(
        jnp.dot(h2v.astype(jnp.bfloat16), wv3_ref[...],
                preferred_element_type=jnp.float32) + bv3_ref[...], 0.0)

    # ---- fused lane-dense final layer: lanes [:A]=logits, lane A=value ----
    out = (jnp.dot(h3p.astype(jnp.bfloat16), w4p_ref[...], preferred_element_type=jnp.float32)
           + jnp.dot(h3v.astype(jnp.bfloat16), w4v_ref[...], preferred_element_type=jnp.float32)
           + b4_ref[...])
    out_ref[...] = out                                              # f32 [TB, 128]


def ppo_heads_forward(feat, params, *, action_dim, tb=256):
    """feat: [B, 512] f32. Returns (logits [B, A], value [B, 1], feat)."""
    B, D = feat.shape
    H = params["wp2"].shape[0]
    A = action_dim
    assert D % 128 == 0 and H % 128 == 0, "feature / hidden dims must be lane-aligned"
    assert A + 1 <= OUT_LANES, "action_dim + 1 must fit in one 128-lane output block"
    assert tb % 8 == 0, "batch tile must be a sublane multiple"

    f32, bf16 = jnp.float32, jnp.bfloat16

    # ---- pack / fuse parameters (wrapper-side layout plumbing) ----
    w1 = jnp.concatenate([params["wp1"], params["wv1"]], axis=1).astype(bf16)   # [D, 2H]
    b1 = jnp.concatenate([params["bp1"], params["bv1"]], axis=1).astype(f32)    # [1, 2H]
    wp2 = params["wp2"].astype(bf16); bp2 = params["bp2"].astype(f32)
    wp3 = params["wp3"].astype(bf16); bp3 = params["bp3"].astype(f32)
    wv2 = params["wv2"].astype(bf16); bv2 = params["bv2"].astype(f32)
    wv3 = params["wv3"].astype(bf16); bv3 = params["bv3"].astype(f32)
    # zero-padded lane-dense final weights: logits in cols [:A], value in col A
    w4p = jnp.zeros((H, OUT_LANES), f32).at[:, :A].set(params["wp4"]).astype(bf16)
    w4v = jnp.zeros((H, OUT_LANES), f32).at[:, A].set(params["wv4"][:, 0]).astype(bf16)
    b4 = (jnp.zeros((1, OUT_LANES), f32)
          .at[:, :A].set(params["bp4"])
          .at[:, A].set(params["bv4"][0, 0]))

    # ---- pad batch to a tile multiple; pad rows sliced off at the end ----
    n_tiles = pl.cdiv(B, tb)
    B_pad = n_tiles * tb
    x = feat.astype(bf16)
    if B_pad != B:
        x = jnp.pad(x, ((0, B_pad - B), (0, 0)))

    def resident(shape):
        return pl.BlockSpec(shape, lambda i: (0, 0))       # DMA'd once, stays in VMEM

    grid_spec = pltpu.PrefetchScalarGridSpec(
        num_scalar_prefetch=0,
        grid=(n_tiles,),
        in_specs=[
            pl.BlockSpec((tb, D), lambda i: (i, 0)),        # x: pipelined over batch
            resident((D, 2 * H)), resident((1, 2 * H)),     # fused layer 1
            resident((H, H)), resident((1, H)),             # policy layer 2
            resident((H, H)), resident((1, H)),             # policy layer 3
            resident((H, H)), resident((1, H)),             # value layer 2
            resident((H, H)), resident((1, H)),             # value layer 3
            resident((H, OUT_LANES)), resident((H, OUT_LANES)), resident((1, OUT_LANES)),
        ],
        out_specs=pl.BlockSpec((tb, OUT_LANES), lambda i: (i, 0)),
    )

    ins = (x, w1, b1, wp2, bp2, wp3, bp3, wv2, bv2, wv3, bv3, w4p, w4v, b4)
    flops = 2 * B_pad * (D * 2 * H + 4 * H * H + 2 * H * OUT_LANES)
    bytes_accessed = (sum(int(a.size) * a.dtype.itemsize for a in ins)
                      + B_pad * OUT_LANES * 4)
    cost = pl.CostEstimate(flops=flops, transcendentals=0, bytes_accessed=bytes_accessed)

    out = pl.pallas_call(
        _ppo_heads_kernel,
        out_shape=jax.ShapeDtypeStruct((B_pad, OUT_LANES), jnp.float32),
        grid_spec=grid_spec,
        compiler_params=pltpu.CompilerParams(
            dimension_semantics=("parallel",),              # v7x: shard batch tiles over 2 TCs
            vmem_limit_bytes=48 * 1024 * 1024,              # fits v7x's 64 MiB physical VMEM
        ),
        cost_estimate=cost,
    )(*ins)

    logits = out[:B, :A]
    value = out[:B, A:A + 1]
    return logits, value, feat


def init_ppo_head_params(key, feat_dim, hidden_dim, action_dim):
    """PyTorch-style uniform(+/- 1/sqrt(fan_in)) init; weights stored [in, out]."""
    ks = jax.random.split(key, 16)

    def lin(kw, kb, fan_in, fan_out):
        bound = 1.0 / jnp.sqrt(jnp.float32(fan_in))
        w = jax.random.uniform(kw, (fan_in, fan_out), jnp.float32, -bound, bound)
        b = jax.random.uniform(kb, (1, fan_out), jnp.float32, -bound, bound)
        return w, b

    wp1, bp1 = lin(ks[0], ks[1], feat_dim, hidden_dim)
    wp2, bp2 = lin(ks[2], ks[3], hidden_dim, hidden_dim)
    wp3, bp3 = lin(ks[4], ks[5], hidden_dim, hidden_dim)
    wp4, bp4 = lin(ks[6], ks[7], hidden_dim, action_dim)
    wv1, bv1 = lin(ks[8], ks[9], feat_dim, hidden_dim)
    wv2, bv2 = lin(ks[10], ks[11], hidden_dim, hidden_dim)
    wv3, bv3 = lin(ks[12], ks[13], hidden_dim, hidden_dim)
    wv4, bv4 = lin(ks[14], ks[15], hidden_dim, 1)
    return dict(wp1=wp1, bp1=bp1, wp2=wp2, bp2=bp2, wp3=wp3, bp3=bp3, wp4=wp4, bp4=bp4,
                wv1=wv1, bv1=bv1, wv2=wv2, bv2=bv2, wv3=wv3, bv3=bv3, wv4=wv4, bv4=bv4)


def ppo_heads_reference(feat, p):
    """Pure-JAX reference mirroring the kernel's bf16-input / f32-accumulate math."""
    def dot(a, w):
        return jnp.dot(a.astype(jnp.bfloat16), w.astype(jnp.bfloat16),
                       preferred_element_type=jnp.float32)

    def mlp(x, w1, b1, w2, b2, w3, b3, w4, b4):
        h = jnp.maximum(dot(x, w1) + b1, 0.0)
        h = jnp.maximum(dot(h, w2) + b2, 0.0)
        h = jnp.maximum(dot(h, w3) + b3, 0.0)
        return dot(h, w4) + b4

    logits = mlp(feat, p["wp1"], p["bp1"], p["wp2"], p["bp2"],
                 p["wp3"], p["bp3"], p["wp4"], p["bp4"])
    value = mlp(feat, p["wv1"], p["bv1"], p["wv2"], p["bv2"],
                p["wv3"], p["bv3"], p["wv4"], p["bv4"])
    return logits, value


if __name__ == "__main__":
    key = jax.random.PRNGKey(0)
    k_x, k_p = jax.random.split(key)

    # Small test shapes (module fixes D=512; default hidden_dim is 1024, A is env-dependent).
    B, D, H, A = 200, 512, 128, 4
    TB = 128                      # exercises padding (200 -> 256) and a 2-step batch grid

    feat = jax.random.normal(k_x, (B, D), jnp.float32)
    params = init_ppo_head_params(k_p, D, H, A)

    logits, value, feat_out = ppo_heads_forward(feat, params, action_dim=A, tb=TB)
    jax.block_until_ready((logits, value))

    ref_logits, ref_value = ppo_heads_reference(feat, params)
    assert logits.shape == (B, A), logits.shape
    assert value.shape == (B, 1), value.shape
    assert feat_out.shape == (B, D), feat_out.shape
    assert jnp.allclose(logits, ref_logits, rtol=1e-2, atol=1e-2), (logits, ref_logits)
    assert jnp.allclose(value, ref_value, rtol=1e-2, atol=1e-2), (value, ref_value)

    print("KERNEL_OK")
</pallas_src>

<mosaic_0001>
module attributes {stable_mosaic.version = 11 : i64} {
  func.func @_ppo_heads_kernel(%arg0: i32, %arg1: memref<128x512xbf16, #tpu.memory_space<vmem>>, %arg2: memref<512x256xbf16, #tpu.memory_space<vmem>>, %arg3: memref<1x256xf32, #tpu.memory_space<vmem>>, %arg4: memref<128x128xbf16, #tpu.memory_space<vmem>>, %arg5: memref<1x128xf32, #tpu.memory_space<vmem>>, %arg6: memref<128x128xbf16, #tpu.memory_space<vmem>>, %arg7: memref<1x128xf32, #tpu.memory_space<vmem>>, %arg8: memref<128x128xbf16, #tpu.memory_space<vmem>>, %arg9: memref<1x128xf32, #tpu.memory_space<vmem>>, %arg10: memref<128x128xbf16, #tpu.memory_space<vmem>>, %arg11: memref<1x128xf32, #tpu.memory_space<vmem>>, %arg12: memref<128x128xbf16, #tpu.memory_space<vmem>>, %arg13: memref<128x128xbf16, #tpu.memory_space<vmem>>, %arg14: memref<1x128xf32, #tpu.memory_space<vmem>>, %arg15: memref<128x128xf32, #tpu.memory_space<vmem>>) attributes {dimension_semantics = [#tpu.dimension_semantics<parallel>], iteration_bounds = array<i64: 2>, scalar_prefetch = 0 : i64, scratch_operands = 0 : i64, tpu.core_type = #tpu.core_type<tc>, window_params = [{transform_indices = @transform_0, window_bounds = array<i64: 128, 512>}, {pipeline_mode = #tpu.pipeline_mode<synchronous>, transform_indices = @transform_1, window_bounds = array<i64: 512, 256>}, {pipeline_mode = #tpu.pipeline_mode<synchronous>, transform_indices = @transform_2, window_bounds = array<i64: 1, 256>}, {pipeline_mode = #tpu.pipeline_mode<synchronous>, transform_indices = @transform_3, window_bounds = array<i64: 128, 128>}, {pipeline_mode = #tpu.pipeline_mode<synchronous>, transform_indices = @transform_4, window_bounds = array<i64: 1, 128>}, {pipeline_mode = #tpu.pipeline_mode<synchronous>, transform_indices = @transform_5, window_bounds = array<i64: 128, 128>}, {pipeline_mode = #tpu.pipeline_mode<synchronous>, transform_indices = @transform_6, window_bounds = array<i64: 1, 128>}, {pipeline_mode = #tpu.pipeline_mode<synchronous>, transform_indices = @transform_7, window_bounds = array<i64: 128, 128>}, {pipeline_mode = #tpu.pipeline_mode<synchronous>, transform_indices = @transform_8, window_bounds = array<i64: 1, 128>}, {pipeline_mode = #tpu.pipeline_mode<synchronous>, transform_indices = @transform_9, window_bounds = array<i64: 128, 128>}, {pipeline_mode = #tpu.pipeline_mode<synchronous>, transform_indices = @transform_10, window_bounds = array<i64: 1, 128>}, {pipeline_mode = #tpu.pipeline_mode<synchronous>, transform_indices = @transform_11, window_bounds = array<i64: 128, 128>}, {pipeline_mode = #tpu.pipeline_mode<synchronous>, transform_indices = @transform_12, window_bounds = array<i64: 128, 128>}, {pipeline_mode = #tpu.pipeline_mode<synchronous>, transform_indices = @transform_13, window_bounds = array<i64: 1, 128>}, {transform_indices = @transform_14, window_bounds = array<i64: 128, 128>}]} {
    %c0 = arith.constant 0 : index
    %c0_0 = arith.constant 0 : index
    %0 = vector.load %arg1[%c0, %c0_0] : memref<128x512xbf16, #tpu.memory_space<vmem>>, vector<128x512xbf16>
    %c0_1 = arith.constant 0 : index
    %c0_2 = arith.constant 0 : index
    %1 = vector.load %arg2[%c0_1, %c0_2] : memref<512x256xbf16, #tpu.memory_space<vmem>>, vector<512x256xbf16>
    %cst = arith.constant dense<0.000000e+00> : vector<128x256xf32>
    %2 = tpu.matmul %0, %1, %cst {dimension_numbers = #tpu.dot_dimension_numbers<[1], [0], [0], [1], [0, 0, 1, 1], [], []>} : vector<128x512xbf16>, vector<512x256xbf16>, vector<128x256xf32> -> vector<128x256xf32>
    %c0_3 = arith.constant 0 : index
    %c0_4 = arith.constant 0 : index
    %3 = vector.load %arg3[%c0_3, %c0_4] : memref<1x256xf32, #tpu.memory_space<vmem>>, vector<1x256xf32>
    %4 = vector.broadcast %3 : vector<1x256xf32> to vector<128x256xf32>
    %5 = arith.addf %2, %4 : vector<128x256xf32>
    %cst_5 = arith.constant 0.000000e+00 : f32
    %6 = vector.broadcast %cst_5 : f32 to vector<128x256xf32>
    %7 = arith.maximumf %5, %6 : vector<128x256xf32>
    %8 = vector.extract_strided_slice %7 {offsets = [0, 0], sizes = [128, 128], strides = [1, 1]} : vector<128x256xf32> to vector<128x128xf32>
    %9 = arith.truncf %8 : vector<128x128xf32> to vector<128x128xbf16>
    %10 = vector.extract_strided_slice %7 {offsets = [0, 128], sizes = [128, 128], strides = [1, 1]} : vector<128x256xf32> to vector<128x128xf32>
    %11 = arith.truncf %10 : vector<128x128xf32> to vector<128x128xbf16>
    %c0_6 = arith.constant 0 : index
    %c0_7 = arith.constant 0 : index
    %12 = vector.load %arg4[%c0_6, %c0_7] : memref<128x128xbf16, #tpu.memory_space<vmem>>, vector<128x128xbf16>
    %cst_8 = arith.constant dense<0.000000e+00> : vector<128x128xf32>
    %13 = tpu.matmul %9, %12, %cst_8 {dimension_numbers = #tpu.dot_dimension_numbers<[1], [0], [0], [1], [0, 0, 1, 1], [], []>} : vector<128x128xbf16>, vector<128x128xbf16>, vector<128x128xf32> -> vector<128x128xf32>
    %c0_9 = arith.constant 0 : index
    %c0_10 = arith.constant 0 : index
    %14 = vector.load %arg5[%c0_9, %c0_10] : memref<1x128xf32, #tpu.memory_space<vmem>>, vector<1x128xf32>
    %15 = vector.broadcast %14 : vector<1x128xf32> to vector<128x128xf32>
    %16 = arith.addf %13, %15 : vector<128x128xf32>
    %cst_11 = arith.constant 0.000000e+00 : f32
    %17 = vector.broadcast %cst_11 : f32 to vector<128x128xf32>
    %18 = arith.maximumf %16, %17 : vector<128x128xf32>
    %19 = arith.truncf %18 : vector<128x128xf32> to vector<128x128xbf16>
    %c0_12 = arith.constant 0 : index
    %c0_13 = arith.constant 0 : index
    %20 = vector.load %arg6[%c0_12, %c0_13] : memref<128x128xbf16, #tpu.memory_space<vmem>>, vector<128x128xbf16>
    %cst_14 = arith.constant dense<0.000000e+00> : vector<128x128xf32>
    %21 = tpu.matmul %19, %20, %cst_14 {dimension_numbers = #tpu.dot_dimension_numbers<[1], [0], [0], [1], [0, 0, 1, 1], [], []>} : vector<128x128xbf16>, vector<128x128xbf16>, vector<128x128xf32> -> vector<128x128xf32>
    %c0_15 = arith.constant 0 : index
    %c0_16 = arith.constant 0 : index
    %22 = vector.load %arg7[%c0_15, %c0_16] : memref<1x128xf32, #tpu.memory_space<vmem>>, vector<1x128xf32>
    %23 = vector.broadcast %22 : vector<1x128xf32> to vector<128x128xf32>
    %24 = arith.addf %21, %23 : vector<128x128xf32>
    %cst_17 = arith.constant 0.000000e+00 : f32
    %25 = vector.broadcast %cst_17 : f32 to vector<128x128xf32>
    %26 = arith.maximumf %24, %25 : vector<128x128xf32>
    %c0_18 = arith.constant 0 : index
    %c0_19 = arith.constant 0 : index
    %27 = vector.load %arg8[%c0_18, %c0_19] : memref<128x128xbf16, #tpu.memory_space<vmem>>, vector<128x128xbf16>
    %cst_20 = arith.constant dense<0.000000e+00> : vector<128x128xf32>
    %28 = tpu.matmul %11, %27, %cst_20 {dimension_numbers = #tpu.dot_dimension_numbers<[1], [0], [0], [1], [0, 0, 1, 1], [], []>} : vector<128x128xbf16>, vector<128x128xbf16>, vector<128x128xf32> -> vector<128x128xf32>
    %c0_21 = arith.constant 0 : index
    %c0_22 = arith.constant 0 : index
    %29 = vector.load %arg9[%c0_21, %c0_22] : memref<1x128xf32, #tpu.memory_space<vmem>>, vector<1x128xf32>
    %30 = vector.broadcast %29 : vector<1x128xf32> to vector<128x128xf32>
    %31 = arith.addf %28, %30 : vector<128x128xf32>
    %cst_23 = arith.constant 0.000000e+00 : f32
    %32 = vector.broadcast %cst_23 : f32 to vector<128x128xf32>
    %33 = arith.maximumf %31, %32 : vector<128x128xf32>
    %34 = arith.truncf %33 : vector<128x128xf32> to vector<128x128xbf16>
    %c0_24 = arith.constant 0 : index
    %c0_25 = arith.constant 0 : index
    %35 = vector.load %arg10[%c0_24, %c0_25] : memref<128x128xbf16, #tpu.memory_space<vmem>>, vector<128x128xbf16>
    %cst_26 = arith.constant dense<0.000000e+00> : vector<128x128xf32>
    %36 = tpu.matmul %34, %35, %cst_26 {dimension_numbers = #tpu.dot_dimension_numbers<[1], [0], [0], [1], [0, 0, 1, 1], [], []>} : vector<128x128xbf16>, vector<128x128xbf16>, vector<128x128xf32> -> vector<128x128xf32>
    %c0_27 = arith.constant 0 : index
    %c0_28 = arith.constant 0 : index
    %37 = vector.load %arg11[%c0_27, %c0_28] : memref<1x128xf32, #tpu.memory_space<vmem>>, vector<1x128xf32>
    %38 = vector.broadcast %37 : vector<1x128xf32> to vector<128x128xf32>
    %39 = arith.addf %36, %38 : vector<128x128xf32>
    %cst_29 = arith.constant 0.000000e+00 : f32
    %40 = vector.broadcast %cst_29 : f32 to vector<128x128xf32>
    %41 = arith.maximumf %39, %40 : vector<128x128xf32>
    %42 = arith.truncf %26 : vector<128x128xf32> to vector<128x128xbf16>
    %c0_30 = arith.constant 0 : index
    %c0_31 = arith.constant 0 : index
    %43 = vector.load %arg12[%c0_30, %c0_31] : memref<128x128xbf16, #tpu.memory_space<vmem>>, vector<128x128xbf16>
    %cst_32 = arith.constant dense<0.000000e+00> : vector<128x128xf32>
    %44 = tpu.matmul %42, %43, %cst_32 {dimension_numbers = #tpu.dot_dimension_numbers<[1], [0], [0], [1], [0, 0, 1, 1], [], []>} : vector<128x128xbf16>, vector<128x128xbf16>, vector<128x128xf32> -> vector<128x128xf32>
    %45 = arith.truncf %41 : vector<128x128xf32> to vector<128x128xbf16>
    %c0_33 = arith.constant 0 : index
    %c0_34 = arith.constant 0 : index
    %46 = vector.load %arg13[%c0_33, %c0_34] : memref<128x128xbf16, #tpu.memory_space<vmem>>, vector<128x128xbf16>
    %cst_35 = arith.constant dense<0.000000e+00> : vector<128x128xf32>
    %47 = tpu.matmul %45, %46, %cst_35 {dimension_numbers = #tpu.dot_dimension_numbers<[1], [0], [0], [1], [0, 0, 1, 1], [], []>} : vector<128x128xbf16>, vector<128x128xbf16>, vector<128x128xf32> -> vector<128x128xf32>
    %48 = arith.addf %44, %47 : vector<128x128xf32>
    %c0_36 = arith.constant 0 : index
    %c0_37 = arith.constant 0 : index
    %49 = vector.load %arg14[%c0_36, %c0_37] : memref<1x128xf32, #tpu.memory_space<vmem>>, vector<1x128xf32>
    %50 = vector.broadcast %49 : vector<1x128xf32> to vector<128x128xf32>
    %51 = arith.addf %48, %50 : vector<128x128xf32>
    %c0_38 = arith.constant 0 : index
    %c0_39 = arith.constant 0 : index
    %52 = vector.load %arg15[%c0_38, %c0_39] : memref<128x128xf32, #tpu.memory_space<vmem>>, vector<128x128xf32>
    tpu.vector_store %arg15[%c0_38, %c0_39], %51 {strides = array<i32>} : memref<128x128xf32, #tpu.memory_space<vmem>>, vector<128x128xf32>,
    return
  }
  func.func @transform_0(%arg0: i32) -> (i32, i32) {
    %c0_i32 = arith.constant 0 : i32
    %c0_i32_0 = arith.constant 0 : i32
    return %arg0, %c0_i32 : i32, i32
  }
  func.func @transform_1(%arg0: i32) -> (i32, i32) {
    %c0_i32 = arith.constant 0 : i32
    %c0_i32_0 = arith.constant 0 : i32
    %c0_i32_1 = arith.constant 0 : i32
    return %c0_i32, %c0_i32_0 : i32, i32
  }
  func.func @transform_2(%arg0: i32) -> (i32, i32) {
    %c0_i32 = arith.constant 0 : i32
    %c0_i32_0 = arith.constant 0 : i32
    %c0_i32_1 = arith.constant 0 : i32
    return %c0_i32, %c0_i32_0 : i32, i32
  }
  func.func @transform_3(%arg0: i32) -> (i32, i32) {
    %c0_i32 = arith.constant 0 : i32
    %c0_i32_0 = arith.constant 0 : i32
    %c0_i32_1 = arith.constant 0 : i32
    return %c0_i32, %c0_i32_0 : i32, i32
  }
  func.func @transform_4(%arg0: i32) -> (i32, i32) {
    %c0_i32 = arith.constant 0 : i32
    %c0_i32_0 = arith.constant 0 : i32
    %c0_i32_1 = arith.constant 0 : i32
    return %c0_i32, %c0_i32_0 : i32, i32
  }
  func.func @transform_5(%arg0: i32) -> (i32, i32) {
    %c0_i32 = arith.constant 0 : i32
    %c0_i32_0 = arith.constant 0 : i32
    %c0_i32_1 = arith.constant 0 : i32
    return %c0_i32, %c0_i32_0 : i32, i32
  }
  func.func @transform_6(%arg0: i32) -> (i32, i32) {
    %c0_i32 = arith.constant 0 : i32
    %c0_i32_0 = arith.constant 0 : i32
    %c0_i32_1 = arith.constant 0 : i32
    return %c0_i32, %c0_i32_0 : i32, i32
  }
  func.func @transform_7(%arg0: i32) -> (i32, i32) {
    %c0_i32 = arith.constant 0 : i32
    %c0_i32_0 = arith.constant 0 : i32
    %c0_i32_1 = arith.constant 0 : i32
    return %c0_i32, %c0_i32_0 : i32, i32
  }
  func.func @transform_8(%arg0: i32) -> (i32, i32) {
    %c0_i32 = arith.constant 0 : i32
    %c0_i32_0 = arith.constant 0 : i32
    %c0_i32_1 = arith.constant 0 : i32
    return %c0_i32, %c0_i32_0 : i32, i32
  }
  func.func @transform_9(%arg0: i32) -> (i32, i32) {
    %c0_i32 = arith.constant 0 : i32
    %c0_i32_0 = arith.constant 0 : i32
    %c0_i32_1 = arith.constant 0 : i32
    return %c0_i32, %c0_i32_0 : i32, i32
  }
  func.func @transform_10(%arg0: i32) -> (i32, i32) {
    %c0_i32 = arith.constant 0 : i32
    %c0_i32_0 = arith.constant 0 : i32
    %c0_i32_1 = arith.constant 0 : i32
    return %c0_i32, %c0_i32_0 : i32, i32
  }
  func.func @transform_11(%arg0: i32) -> (i32, i32) {
    %c0_i32 = arith.constant 0 : i32
    %c0_i32_0 = arith.constant 0 : i32
    %c0_i32_1 = arith.constant 0 : i32
    return %c0_i32, %c0_i32_0 : i32, i32
  }
  func.func @transform_12(%arg0: i32) -> (i32, i32) {
    %c0_i32 = arith.constant 0 : i32
    %c0_i32_0 = arith.constant 0 : i32
    %c0_i32_1 = arith.constant 0 : i32
    return %c0_i32, %c0_i32_0 : i32, i32
  }
  func.func @transform_13(%arg0: i32) -> (i32, i32) {
    %c0_i32 = arith.constant 0 : i32
    %c0_i32_0 = arith.constant 0 : i32
    %c0_i32_1 = arith.constant 0 : i32
    return %c0_i32, %c0_i32_0 : i32, i32
  }
  func.func @transform_14(%arg0: i32) -> (i32, i32) {
    %c0_i32 = arith.constant 0 : i32
    %c0_i32_0 = arith.constant 0 : i32
    return %arg0, %c0_i32 : i32, i32
  }
}

</mosaic_0001>

<bundles_post_ra>
// kernel: tpu_custom_call.1
= control target key start
LH: loop header
LB: loop body
LE: loop exit
PB: predicated region body
PF: predicated region fallthrough
CT: control target
= control target key end

     0   :  { %s4628_s0 = inlined_call_operand.hbm [shape: bf16[256,512], index: 0, kind: input, shape index: {}]   ;;  %s4629_s1 = inlined_call_operand.hbm [shape: bf16[512,256], index: 1, kind: input, shape index: {}]   ;;  %s4630_s2 = inlined_call_operand.vmem [shape: f32[1,256], index: 2, kind: input, shape index: {}]   ;;  %s4631_s3 = inlined_call_operand.hbm [shape: bf16[128,128], index: 3, kind: input, shape index: {}]   ;;  %s4632_s4 = inlined_call_operand.vmem [shape: f32[1,128], index: 4, kind: input, shape index: {}]   ;;  %s4633_s5 = inlined_call_operand.hbm [shape: bf16[128,128], index: 5, kind: input, shape index: {}]   ;;  %s4634_s6 = inlined_call_operand.vmem [shape: f32[1,128], index: 6, kind: input, shape index: {}]   ;;  %s4635_s7 = inlined_call_operand.hbm [shape: bf16[128,128], index: 7, kind: input, shape index: {}]   ;;  %s4636_s8 = inlined_call_operand.vmem [shape: f32[1,128], index: 8, kind: input, shape index: {}]   ;;  %s4637_s9 = inlined_call_operand.hbm [shape: bf16[128,128], index: 9, kind: input, shape index: {}]   ;;  %s4638_s10 = inlined_call_operand.vmem [shape: f32[1,128], index: 10, kind: input, shape index: {}]   ;;  %s4639_s11 = inlined_call_operand.hbm [shape: bf16[128,128], index: 11, kind: input, shape index: {}]   ;;  %s4640_s12 = inlined_call_operand.hbm [shape: bf16[128,128], index: 12, kind: input, shape index: {}]   ;;  %s4641_s13 = inlined_call_operand.vmem [shape: f32[1,128], index: 13, kind: input, shape index: {}]   ;;  %s4642_s14 = inlined_call_operand.hbm [shape: f32[256,128], index: 14, kind: output, shape index: {}]  }
   0x1   :  { %4647 = sst [smem:[#allocation23_spill]] %s4629_s1 }
   0x2   :  { %4648 = sst [smem:[#allocation24_spill]] %s4632_s4 }
   0x3   :  { %4649 = sst [smem:[#allocation25_spill]] %s4634_s6 }
   0x4   :  { %4650 = sst [smem:[#allocation26_spill]] %s4636_s8 }
   0x5   :  { %4651 = sst [smem:[#allocation27_spill]] %s4638_s10 }
   0x6   :  { %4652 = sst [smem:[#allocation28_spill]] %s4641_s13 }
   0x7   :  { %4653 = sst [smem:[#allocation29_spill]] %s4642_s14 }
   0x8   :  { %19 = vsyncpa [#allocation3], 0 }
   0x9   :  { %21 = vsyncpa [#allocation3 + $0x1], 0 }
   0xa   :  { %22 = vsyncpa [#allocation6], 0 }
   0xb   :  { %23 = vsyncpa [#allocation9], 0 }
   0xc   :  { %24 = vsyncpa [#allocation12], 0 }
   0xd   :  { %25 = vsyncpa [#allocation15], 0 }
   0xe   :  { %26 = vsyncpa [#allocation4], 0 }
   0xf   :  { %28 = vsyncpa [#allocation4 + $0x1], 0  ;;  %s4021_s29 = smov 0   ;;  %s4023_s30 = smov 0  }
  0x10   :  { %s4025_s15 = smov 0   ;;  %s4027_s16 = smov 0  }
  0x11 LB: > { %s3929_s17 = smov [#allocation5]   ;;  %s4042_s19 = sadd.s32 4294967295, %s3927_s16   ;;  %s3927_s16 = sphi %s4027_s16, %s4684_s16   ;;  %s3923_s15 = sphi %s4025_s15, %s4683_s15   ;;  %s3919_s30 = sphi %s4023_s30, %s4682_s30   ;;  %s3915_s29 = sphi %s4021_s29, %s4681_s29  }
  0x12   : > { %s376_s18 = sshll.u32 %s3929_s17, 4  ;;  %p2738_p0 = scmp.ge.s32.totalorder %s3927_s16, 1  ;;  %s4047_s18 = int_to_ptr.vmem [resolvable:$true] %s376_s18 }
  0x13   : > { %p4644_p1 = scmp.eq.s32.totalorder %s4042_s19, 0  ;;  %p364_p2 = scmp.lt.s32.totalorder %s3927_s16, 3 }
  0x14   : > { %s3930_s22 = smov [#allocation8]   ;;  %s3931_s24 = smov [#allocation11]  }
  0x15   : > { %p4049_p3 = pnand %p2738_p0, %p364_p2  ;;  %s408_s23 = sshll.u32 %s3930_s22, 4  ;;  %s4062_s23 = int_to_ptr.vmem [resolvable:$true] %s408_s23 }
  0x16   : > { %s4064_s25 = sshll.u32 %s3931_s24, 4  ;;  %s4656_s1 = sld [smem:[#allocation23_spill]]  ;;  %s441_s25 = int_to_ptr.vmem [resolvable:$true] %s4064_s25 }
  0x17   : > { %s4654_s20 = scalar_select %p4049_p3, 1, 0 }
  0x18   : > { %p3334_p5 = pneg %p4049_p3 }
  0x1a   : > { %p4058_p6 = pnand %p3334_p5, %p4644_p1 }
  0x1c   : > { %s3619_s28 = scalar_lea.hbm %s4656_s1, 8192  ;;  %p4074_p8 = pneg %p4058_p6 }
  0x1d   : > { %p3620_p7 = scmp.ne.s32.totalorder %s4656_s1, %s3619_s28  ;;  %p3626_p11 = scmp.lt.u32.totalorder %s3619_s28, %s4656_s1 }
  0x1f   : > { %p3622_p9 = pnand %p4074_p8, %p3620_p7 }
  0x21   : > { %p3623_p10 = pneg %p3622_p9 }
  0x23   : > { %p3628_p12 = pnand %p3626_p11, %p3623_p10 }
  0x25   : > { %3631 = shalt.err (!%p3628_p12)
}
  0x26   : > { %s3632_s14 = scalar_lea.vmem %s4047_s18, 8192  ;;  %p3640_p5 = scmp.lt.s32.totalorder %s4047_s18, %s4047_s18 }
  0x27   : > { %p3633_p13 = scmp.ne.s32.totalorder %s4047_s18, %s3632_s14  ;;  %p3641_p4 = scmp.lt.s32.totalorder %s3632_s14, %s3632_s14 }
  0x29   : > { %p3635_p0 = pnand %p3633_p13, %p4074_p8  ;;  %p3642_p7 = por %p3641_p4, %p3640_p5 }
  0x2b   : > { %p3636_p2 = pneg %p3635_p0 }
  0x2d   : > { %p3643_p9 = pnand %p3642_p7, %p3636_p2 }
  0x2f   : > { %3646 = shalt.err (!%p3643_p9)
}
  0x30   : > { %s3932_s26 = smov 128   ;;  %s3933_s27 = smov 8  }
  0x31   : > { %3337 = dma.hbm_to_vmem [thread:$0]  (!%p4058_p6), %s4656_s1, 8192, %s4047_s18, [#allocation6], %s3932_s26, %s3932_s26, %s3933_s27  }
  0x32   : > { %s3647_s10 = scalar_lea.hbm %s4633_s5, 1024 }
  0x33   : > { %p3648_p4 = scmp.ne.s32.totalorder %s4633_s5, %s3647_s10  ;;  %p3654_p12 = scmp.lt.u32.totalorder %s3647_s10, %s4633_s5 }
  0x35   : > { %p3650_p10 = pnand %p3648_p4, %p4074_p8 }
  0x37   : > { %p3651_p11 = pneg %p3650_p10 }
  0x39   : > { %p3656_p13 = pnand %p3654_p12, %p3651_p11 }
  0x3b   : > { %3659 = shalt.err (!%p3656_p13)
}
  0x3c   : > { %s3660_s18 = scalar_lea.vmem %s4062_s23, 1024  ;;  %p3668_p7 = scmp.lt.s32.totalorder %s4062_s23, %s4062_s23 }
  0x3d   : > { %p3661_p0 = scmp.ne.s32.totalorder %s4062_s23, %s3660_s18  ;;  %p3669_p9 = scmp.lt.s32.totalorder %s3660_s18, %s3660_s18 }
  0x3f   : > { %p3663_p2 = pnand %p3661_p0, %p4074_p8  ;;  %p3670_p4 = por %p3669_p9, %p3668_p7 }
  0x41   : > { %p3664_p5 = pneg %p3663_p2 }
  0x43   : > { %p3671_p10 = pnand %p3670_p4, %p3664_p5 }
  0x45   : > { %3674 = shalt.err (!%p3671_p10)
}
  0x46   : > { %s3934_s6 = smov 64   ;;  %s3935_s4 = smov 4  }
  0x47   : > { %3343 = dma.hbm_to_vmem [thread:$0]  (!%p4058_p6), %s4633_s5, 1024, %s4062_s23, [#allocation9], %s3934_s6, %s3934_s6, %s3935_s4  }
  0x48   : > { %s3675_s28 = scalar_lea.hbm %s4637_s9, 1024 }
  0x49   : > { %p3676_p11 = scmp.ne.s32.totalorder %s4637_s9, %s3675_s28  ;;  %p3682_p0 = scmp.lt.u32.totalorder %s3675_s28, %s4637_s9 }
  0x4b   : > { %p3678_p12 = pnand %p3676_p11, %p4074_p8 }
  0x4d   : > { %p3679_p13 = pneg %p3678_p12 }
  0x4f   : > { %p3684_p2 = pnand %p3682_p0, %p3679_p13 }
  0x51   : > { %3687 = shalt.err (!%p3684_p2)
}
  0x52   : > { %s3688_s18 = scalar_lea.vmem %s441_s25, 1024  ;;  %p3696_p4 = scmp.lt.s32.totalorder %s441_s25, %s441_s25 }
  0x53   : > { %p3689_p5 = scmp.ne.s32.totalorder %s441_s25, %s3688_s18  ;;  %p3697_p10 = scmp.lt.s32.totalorder %s3688_s18, %s3688_s18 }
  0x55   : > { %p3691_p7 = pnand %p3689_p5, %p4074_p8  ;;  %p3698_p1 = por %p3697_p10, %p3696_p4 }
  0x57   : > { %p3692_p9 = pneg %p3691_p7 }
  0x59   : > { %p3699_p3 = pnand %p3698_p1, %p3692_p9 }
  0x5b   : > { %3702 = shalt.err (!%p3699_p3)
}
  0x5c   : > { %3349 = dma.hbm_to_vmem [thread:$0]  (!%p4058_p6), %s4637_s9, 1024, %s441_s25, [#allocation12], %s3934_s6, %s3934_s6, %s3935_s4  }
  0x5d   : > { %s3936_s10 = smov [#allocation7]   ;;  %s3937_s27 = smov [#allocation10]  }
  0x5e   : > { %s392_s26 = sshll.u32 %s3936_s10, 4  ;;  %s424_s28 = sshll.u32 %s3937_s27, 4  ;;  %s393_s26 = int_to_ptr.vmem [resolvable:$true] %s392_s26  ;;  %s425_s28 = int_to_ptr.vmem [resolvable:$true] %s424_s28 }
  0x5f   : > { %s3703_s24 = scalar_lea.hbm %s4631_s3, 1024 }
  0x60   : > { %p3704_p1 = scmp.ne.s32.totalorder %s4631_s3, %s3703_s24  ;;  %p3710_p12 = scmp.lt.u32.totalorder %s3703_s24, %s4631_s3 }
  0x62   : > { %p3706_p3 = pnand %p3704_p1, %p4074_p8 }
  0x64   : > { %p3707_p11 = pneg %p3706_p3 }
  0x66   : > { %p3712_p13 = pnand %p3710_p12, %p3707_p11 }
  0x68   : > { %3715 = shalt.err (!%p3712_p13)
}
  0x69   : > { %s3716_s25 = scalar_lea.vmem %s393_s26, 1024  ;;  %p3724_p7 = scmp.lt.s32.totalorder %s393_s26, %s393_s26 }
  0x6a   : > { %p3717_p0 = scmp.ne.s32.totalorder %s393_s26, %s3716_s25  ;;  %p3725_p9 = scmp.lt.s32.totalorder %s3716_s25, %s3716_s25 }
  0x6c   : > { %p3719_p2 = pnand %p3717_p0, %p4074_p8  ;;  %p3726_p4 = por %p3725_p9, %p3724_p7 }
  0x6e   : > { %p3720_p5 = pneg %p3719_p2 }
  0x70   : > { %p3727_p10 = pnand %p3726_p4, %p3720_p5 }
  0x72   : > { %3730 = shalt.err (!%p3727_p10)
}
  0x73   : > { %3340 = dma.hbm_to_vmem [thread:$0]  (!%p4058_p6), %s4631_s3, 1024, %s393_s26, [#allocation6], %s3934_s6, %s3934_s6, %s3935_s4  }
  0x74   : > { %s3731_s17 = scalar_lea.hbm %s4635_s7, 1024 }
  0x75   : > { %p3732_p1 = scmp.ne.s32.totalorder %s4635_s7, %s3731_s17  ;;  %p3738_p12 = scmp.lt.u32.totalorder %s3731_s17, %s4635_s7 }
  0x77   : > { %p3734_p3 = pnand %p3732_p1, %p4074_p8 }
  0x79   : > { %p3735_p11 = pneg %p3734_p3 }
  0x7b   : > { %p3740_p13 = pnand %p3738_p12, %p3735_p11 }
  0x7d   : > { %3743 = shalt.err (!%p3740_p13)
}
  0x7e   : > { %s3744_s23 = scalar_lea.vmem %s425_s28, 1024  ;;  %p3752_p7 = scmp.lt.s32.totalorder %s425_s28, %s425_s28 }
  0x7f   : > { %p3745_p0 = scmp.ne.s32.totalorder %s425_s28, %s3744_s23  ;;  %p3753_p9 = scmp.lt.s32.totalorder %s3744_s23, %s3744_s23 }
  0x81   : > { %p3747_p2 = pnand %p3745_p0, %p4074_p8  ;;  %p3754_p4 = por %p3753_p9, %p3752_p7 }
  0x83   : > { %p3748_p5 = pneg %p3747_p2 }
  0x85   : > { %p3755_p10 = pnand %p3754_p4, %p3748_p5 }
  0x87   : > { %3758 = shalt.err (!%p3755_p10)
}
  0x88   : > { %3346 = dma.hbm_to_vmem [thread:$0]  (!%p4058_p6), %s4635_s7, 1024, %s425_s28, [#allocation9], %s3934_s6, %s3934_s6, %s3935_s4  }
  0x89   : > { %s3938_s1 = smov [#allocation13]   ;;  %s3939_s10 = smov [#allocation14]  }
  0x8a   : > { %s456_s8 = sshll.u32 %s3938_s1, 4  ;;  %s469_s27 = sshll.u32 %s3939_s10, 4  ;;  %s457_s8 = int_to_ptr.vmem [resolvable:$true] %s456_s8  ;;  %s470_s27 = int_to_ptr.vmem [resolvable:$true] %s469_s27 }
  0x8b   : > { %s3759_s24 = scalar_lea.hbm %s4639_s11, 1024 }
  0x8c   : > { %p3760_p1 = scmp.ne.s32.totalorder %s4639_s11, %s3759_s24  ;;  %p3766_p12 = scmp.lt.u32.totalorder %s3759_s24, %s4639_s11 }
  0x8e   : > { %p3762_p3 = pnand %p3760_p1, %p4074_p8 }
  0x90   : > { %p3763_p11 = pneg %p3762_p3 }
  0x92   : > { %p3768_p13 = pnand %p3766_p12, %p3763_p11 }
  0x94   : > { %3771 = shalt.err (!%p3768_p13)
}
  0x95   : > { %s3772_s28 = scalar_lea.vmem %s457_s8, 1024  ;;  %p3780_p7 = scmp.lt.s32.totalorder %s457_s8, %s457_s8 }
  0x96   : > { %p3773_p0 = scmp.ne.s32.totalorder %s457_s8, %s3772_s28  ;;  %p3781_p9 = scmp.lt.s32.totalorder %s3772_s28, %s3772_s28 }
  0x98   : > { %p3775_p2 = pnand %p3773_p0, %p4074_p8  ;;  %p3782_p4 = por %p3781_p9, %p3780_p7 }
  0x9a   : > { %p3776_p5 = pneg %p3775_p2 }
  0x9c   : > { %p3783_p10 = pnand %p3782_p4, %p3776_p5 }
  0x9e   : > { %3786 = shalt.err (!%p3783_p10)
}
  0x9f   : > { %3352 = dma.hbm_to_vmem [thread:$0]  (!%p4058_p6), %s4639_s11, 1024, %s457_s8, [#allocation12], %s3934_s6, %s3934_s6, %s3935_s4  }
  0xa0   : > { %s3787_s22 = scalar_lea.hbm %s4640_s12, 1024 }
  0xa1   : > { %p3788_p1 = scmp.ne.s32.totalorder %s4640_s12, %s3787_s22  ;;  %p3794_p12 = scmp.lt.u32.totalorder %s3787_s22, %s4640_s12 }
  0xa3   : > { %p3790_p3 = pnand %p3788_p1, %p4074_p8 }
  0xa5   : > { %p3791_p11 = pneg %p3790_p3 }
  0xa7   : > { %p3796_p13 = pnand %p3794_p12, %p3791_p11 }
  0xa9   : > { %3799 = shalt.err (!%p3796_p13)
}
  0xaa   : > { %s3800_s26 = scalar_lea.vmem %s470_s27, 1024  ;;  %p3808_p7 = scmp.lt.s32.totalorder %s470_s27, %s470_s27 }
  0xab   : > { %p3801_p0 = scmp.ne.s32.totalorder %s470_s27, %s3800_s26  ;;  %p3809_p9 = scmp.lt.s32.totalorder %s3800_s26, %s3800_s26 }
  0xad   : > { %p3803_p2 = pnand %p3801_p0, %p4074_p8  ;;  %p3810_p4 = por %p3809_p9, %p3808_p7 }
  0xaf   : > { %p3804_p5 = pneg %p3803_p2 }
  0xb1   : > { %p3811_p10 = pnand %p3810_p4, %p3804_p5 }
  0xb3   : > { %3814 = shalt.err (!%p3811_p10)
}
  0xb4   : > { %3355 = dma.hbm_to_vmem [thread:$0]  (!%p4058_p6), %s4640_s12, 1024, %s470_s27, [#allocation15], %s3934_s6, %s3934_s6, %s3935_s4  }
  0xb5   : > { %s2737_s13 = sadd.s32 4294967294, %s3927_s16   ;;  %s4229_s21 = sadd.s32 1, %s3927_s16  }
  0xb6   : > { %s41_s25 = sadd.s32 1, %s3923_s15  ;;  %s38_s1 = ssub.s32 %s3927_s16, %s4229_s21 }
  0xb7   : > { %p48_p8 = scmp.ne.s32.totalorder %s3923_s15, %s3919_s30  ;;  %p39_p1 = scmp.eq.s32.totalorder %s38_s1, 0 }
  0xb8   : > { %p49_p3 = scmp.eq.s32.totalorder %s3927_s16, 0  ;;  %p54_p11 = scmp.ne.s32.totalorder %s3919_s30, %s3915_s29 }
  0xb9   : > { %p351_p12 = scmp.eq.s32.totalorder %s4042_s19, 1  ;;  %p4658_p0 = scmp.eq.s32.totalorder %s4042_s19, 0 }
  0xba   : > { %s4241_s10 = scalar_select %p39_p1, %s3923_s15, %s41_s25  }
  0xbb   : > { %p50_p13 = por %p49_p3, %p48_p8  ;;  %p4245_p2 = por %p4658_p0, %p54_p11 }
  0xbc   : > { %p4249_p6 = por %p351_p12, %p48_p8  ;;  %p357_p5 = scmp.eq.s32.totalorder %s2737_s13, 1 }
  0xbd   : > { %p3371_p7 = scmp.lt.s32.totalorder %s3927_s16, 2  ;;  %s486_s4 = sand.u32 1, %s3923_s15  }
  0xbe   : > { %s4660_s6 = scalar_select %p4249_p6, 1, 0 }
  0xbf   : > { %p4255_p9 = por %p357_p5, %p54_p11  ;;  %s2747_s22 = sshll.u32 %s486_s4, 8 }
  0xc0   : > { %s2916_s24 = sshll.u32 %s3927_s16, 12  ;;  %s490_s26 = scalar_lea.vmem [#allocation2], %s2747_s22 }
  0xc1   : > { %s4661_s27 = scalar_select %p4255_p9, 1, 0 }
  0xc2   : > { %s4263_s23 = scalar_lea.hbm %s4628_s0, %s2916_s24  ;;  %s498_s8 = sshll.u32 %s490_s26, 4  ;;  %s4269_s8 = int_to_ptr.vmem [resolvable:$true] %s498_s8 }
  0xc3   : > { %p4265_p4 = pnand %p3371_p7, %p50_p13  ;;  %s4271_s13 = scalar_lea.sflag [#allocation3], %s486_s4 }
  0xc4   : > { %s3815_s25 = scalar_lea.hbm %s4263_s23, 4096  ;;  %s3820_s24 = scalar_lea.hbm %s4628_s0, 8192 }
  0xc5   : > { %p3816_p10 = scmp.ne.s32.totalorder %s4263_s23, %s3815_s25  ;;  %p3817_p8 = pneg %p4265_p4 }
  0xc6   : > { %p3821_p11 = scmp.lt.u32.totalorder %s4263_s23, %s4628_s0  ;;  %p3822_p12 = scmp.lt.u32.totalorder %s3820_s24, %s3815_s25 }
  0xc7   : > { %p3818_p1 = pnand %p3817_p8, %p3816_p10  ;;  %p3824_p0 = scmp.lt.u32.totalorder %s3815_s25, %s4263_s23 }
  0xc8   : > { %p3823_p13 = por %p3822_p12, %p3821_p11 }
  0xc9   : > { %p3819_p3 = pneg %p3818_p1 }
  0xca   : > { %p3825_p5 = por %p3824_p0, %p3823_p13 }
  0xcc   : > { %p3826_p7 = pnand %p3825_p5, %p3819_p3 }
  0xce   : > { %3829 = shalt.err (!%p3826_p7)
}
  0xcf   : > { %s3830_s4 = scalar_lea.vmem %s4269_s8, 4096  ;;  %s3940_s26 = smov [#allocation2]  }
  0xd0   : > { %p3831_p10 = scmp.ne.s32.totalorder %s4269_s8, %s3830_s4  ;;  %s3835_s1 = sshll.u32 %s3940_s26, 4  ;;  %s3836_s1 = int_to_ptr.vmem [resolvable:$false] %s3835_s1 }
  0xd1   : > { %s3837_s22 = scalar_lea.vmem %s3836_s1, 8192  ;;  %p3838_p6 = scmp.lt.s32.totalorder %s4269_s8, %s3836_s1 }
  0xd2   : > { %p3833_p1 = pnand %p3831_p10, %p3817_p8  ;;  %p3839_p11 = scmp.lt.s32.totalorder %s3837_s22, %s3830_s4 }
  0xd4   : > { %p3834_p9 = pneg %p3833_p1  ;;  %p3840_p12 = por %p3839_p11, %p3838_p6 }
  0xd6   : > { %p3841_p13 = pnand %p3840_p12, %p3834_p9 }
  0xd8   : > { %3844 = shalt.err (!%p3841_p13)
}
  0xd9   : > { %s3941_s25 = smov 256   ;;  %s3942_s24 = smov 16  }
  0xda   : > { %3359 = dma.hbm_to_vmem [thread:$0]  (!%p4265_p4), %s4263_s23, 4096, %s4269_s8, %s4271_s13, %s3941_s25, %s3941_s25, %s3942_s24  }
  0xdb   : > { %p4663_p8 = scmp.ne.s32.totalorder %s4654_s20, 0 }
  0xdc   : > { %s4302_s14 = sand.u32 (!%p4663_p8), 1, %s3919_s30  }
  0xdd   : > { %510 = sbr.rel (%p4663_p8) target bundleno = 1593 (0x639), region = 76  ;;  %s2752_s18 = sshll.u32 (!%p4663_p8), %s4302_s14, 8 }
  0xde   : > { %s513_s4 = scalar_lea.sflag (!%p4663_p8), [#allocation3], %s4302_s14  ;;  %s4306_s26 = scalar_lea.vmem (!%p4663_p8), [#allocation2], %s2752_s18 }
  0xe4   : > { %3890 = dma.done.wait (%p4245_p2), %s513_s4, 4096  }
  0xe5   : > { %3892 = vsyncadd (%p4245_p2), %s513_s4, 4294963200  ;;  %p4664_p6 = scmp.eq.s32.totalorder %s4042_s19, 0 }
  0xe7   : > { %3894 = dma.done.wait (%p4664_p6), [#allocation6], 9216   ;;  %p4665_p9 = pmov %p4664_p6 }
  0xe8   : > { %p4666_p4 = pmov %p4664_p6 }
  0xe9   : > { %3896 = vsyncadd (%p4665_p9), [#allocation6], 4294958080 }
  0xea   : > { %3898 = dma.done.wait (%p4666_p4), [#allocation9], 2048   ;;  %p4667_p3 = pmov %p4666_p4 }
  0xec   : > { %3900 = vsyncadd (%p4667_p3), [#allocation9], 4294965248  ;;  %p4668_p0 = pmov %p4667_p3 }
  0xee   : > { %3902 = dma.done.wait (%p4668_p0), [#allocation12], 2048   ;;  %p4669_p5 = pmov %p4668_p0 }
  0xef   : > { %p4670_p2 = pmov %p4668_p0 }
  0xf0   : > { %3904 = vsyncadd (%p4669_p5), [#allocation12], 4294965248 }
  0xf1   : > { %3906 = dma.done.wait (%p4670_p2), [#allocation15], 1024   ;;  %p4671_p7 = pmov %p4668_p0 }
  0xf2   : > { %v3427_v0 = vld [vmem:[#allocation5 + $0x4] ss:$8 sps:$4 sm:$0xff]   ;;  %v3429_v1 = vld [vmem:[#allocation5] ss:$8 sps:$4 sm:$0xff]   ;;  %v3430_v2 = vld [vmem:[#allocation5 + $0x14] ss:$8 sps:$4 sm:$0xff]  }
  0xf3   : > { %3908 = vsyncadd (%p4671_p7), [#allocation15], 4294966272  ;;  %1180 = vmatprep.subr.bf16.mxu0 %v3427_v0  ;;  %v3432_v3 = vld [vmem:[#allocation5 + $0x10] ss:$8 sps:$4 sm:$0xff]   ;;  %v3433_v4 = vld [vmem:[#allocation5 + $0x24] ss:$8 sps:$4 sm:$0xff]  }
  0xf4   : > { %1181 = vmatpush1.bf16.msra.mxu0 %v3429_v1  ;;  %v3435_v5 = vld [vmem:[#allocation5 + $0x20] ss:$8 sps:$4 sm:$0xff]   ;;  %v3436_v6 = vld [vmem:[#allocation5 + $0x34] ss:$8 sps:$4 sm:$0xff]   ;;  %v3438_v7 = vld [vmem:[#allocation5 + $0x30] ss:$8 sps:$4 sm:$0xff]  }
  0xf5   : > { %1182 = vmatprep.subr.bf16.mxu0 %v3430_v2  ;;  %v3439_v8 = vld [vmem:[#allocation5 + $0x44] ss:$8 sps:$4 sm:$0xff]   ;;  %v3441_v9 = vld [vmem:[#allocation5 + $0x40] ss:$8 sps:$4 sm:$0xff]   ;;  %v3442_v10 = vld [vmem:[#allocation5 + $0x54] ss:$8 sps:$4 sm:$0xff]  }
  0xf6   : > { %v3444_v11 = vld [vmem:[#allocation5 + $0x50] ss:$8 sps:$4 sm:$0xff]   ;;  %v3445_v12 = vld [vmem:[#allocation5 + $0x64] ss:$8 sps:$4 sm:$0xff]   ;;  %v3447_v14 = vld [vmem:[#allocation5 + $0x60] ss:$8 sps:$4 sm:$0xff]  }
  0xf7   : > { %v3477_v13 = vld [vmem:[%s4306_s26 + $0x4] ss:$16 sps:$4 sm:$0xff]   ;;  %v3450_v16 = vld [vmem:[#allocation5 + $0x70] ss:$8 sps:$4 sm:$0xff]   ;;  %v3453_v18 = vld [vmem:[#allocation5 + $0x80] ss:$8 sps:$4 sm:$0xff]  }
  0xf8   : > { %1183 = vmatpush1.bf16.msra.mxu0 %v3432_v3  ;;  %v3448_v15 = vld [vmem:[#allocation5 + $0x74] ss:$8 sps:$4 sm:$0xff]   ;;  %1212 = vmatprep.mubr.bf16.mxu0 %v3477_v13  ;;  %v3451_v17 = vld [vmem:[#allocation5 + $0x84] ss:$8 sps:$4 sm:$0xff]   ;;  %v3456_v20 = vld [vmem:[#allocation5 + $0x90] ss:$8 sps:$4 sm:$0xff]  }
  0xf9   : > { %1184 = vmatprep.subr.bf16.mxu0 %v3433_v4  ;;  %v3454_v19 = vld [vmem:[#allocation5 + $0x94] ss:$8 sps:$4 sm:$0xff]   ;;  %v3457_v21 = vld [vmem:[#allocation5 + $0xa4] ss:$8 sps:$4 sm:$0xff]   ;;  %v3459_v22 = vld [vmem:[#allocation5 + $0xa0] ss:$8 sps:$4 sm:$0xff]  }
  0xfa   : > { %v3460_v23 = vld [vmem:[#allocation5 + $0xb4] ss:$8 sps:$4 sm:$0xff]   ;;  %v3462_v24 = vld [vmem:[#allocation5 + $0xb0] ss:$8 sps:$4 sm:$0xff]   ;;  %v3463_v25 = vld [vmem:[#allocation5 + $0xc4] ss:$8 sps:$4 sm:$0xff]  }
  0xfb   : > { %v3465_v26 = vld [vmem:[#allocation5 + $0xc0] ss:$8 sps:$4 sm:$0xff]   ;;  %v3466_v27 = vld [vmem:[#allocation5 + $0xd4] ss:$8 sps:$4 sm:$0xff]   ;;  %v3468_v28 = vld [vmem:[#allocation5 + $0xd0] ss:$8 sps:$4 sm:$0xff]  }
  0xfc   : > { %1185 = vmatpush1.bf16.msra.mxu0 %v3435_v5  ;;  %v3469_v29 = vld [vmem:[#allocation5 + $0xe4] ss:$8 sps:$4 sm:$0xff]   ;;  %v3471_v30 = vld [vmem:[#allocation5 + $0xe0] ss:$8 sps:$4 sm:$0xff]   ;;  %v3472_v31 = vld [vmem:[#allocation5 + $0xf4] ss:$8 sps:$4 sm:$0xff]  }
  0xfd   : > { %1186 = vmatprep.subr.bf16.mxu0 %v3436_v6  ;;  %v3474_v32 = vld [vmem:[#allocation5 + $0xf0] ss:$8 sps:$4 sm:$0xff]   ;;  %v3480_v33 = vld [vmem:[#allocation5 + $0x104] ss:$8 sps:$4 sm:$0xff]   ;;  %v3478_v35 = vld [vmem:[#allocation5 + $0x100] ss:$8 sps:$4 sm:$0xff]  }
  0xfe   : > { %v3475_v34 = vld [vmem:[%s4306_s26] ss:$16 sps:$4 sm:$0xff]   ;;  %v3483_v36 = vld [vmem:[#allocation5 + $0x114] ss:$8 sps:$4 sm:$0xff]   ;;  %v3572_v39 = vld [vmem:[#allocation7 + $0x8] sm:$0xff]   ;;  %s4672_s28 = sld [smem:[#allocation24_spill]] }
  0xff   : > { %v3484_v37 = vld [vmem:[%s4306_s26 + $0x24] ss:$16 sps:$4 sm:$0xff]   ;;  %v3481_v40 = vld [vmem:[#allocation5 + $0x110] ss:$8 sps:$4 sm:$0xff]   ;;  %v3487_v44 = vld [vmem:[#allocation5 + $0x120] ss:$8 sps:$4 sm:$0xff]  }
 0x100   : > { %1187 = vmatpush1.bf16.msra.mxu0 %v3438_v7  ;;  %v3571_v38 = vld [vmem:[#allocation7] sm:$0xff]   ;;  %v3573_v43 = vld [vmem:[#allocation7 + $0x10] sm:$0xff]   ;;  %v3574_v47 = vld [vmem:[#allocation7 + $0x18] sm:$0xff]   ;;  %s4673_s22 = sld [smem:[#allocation25_spill]]  ;;  %s4674_s18 = sld [smem:[#allocation26_spill]] }
 0x101   : > { %1188 = vmatprep.subr.bf16.mxu0 %v3439_v8  ;;  %3014 = vmatprep.subr.bf16.mxu1 %v3571_v38  ;;  %v3489_v41 = vld [vmem:[#allocation5 + $0x124] ss:$8 sps:$4 sm:$0xff]   ;;  %v3486_v42 = vld [vmem:[%s4306_s26 + $0x20] ss:$16 sps:$4 sm:$0xff]   ;;  %v3492_v46 = vld [vmem:[#allocation5 + $0x134] ss:$8 sps:$4 sm:$0xff]  }
 0x102   : > { %3015 = vmatpush3.bf16.msra.mxu1 %v3571_v38  ;;  %v3493_v45 = vld [vmem:[%s4306_s26 + $0x44] ss:$16 sps:$4 sm:$0xff]   ;;  %v3490_v48 = vld [vmem:[#allocation5 + $0x130] ss:$8 sps:$4 sm:$0xff]   ;;  %v3496_v51 = vld [vmem:[#allocation5 + $0x140] ss:$8 sps:$4 sm:$0xff]  }
 0x103   : > { %3016 = vmatprep.subr.bf16.mxu1 %v3572_v39  ;;  %v3498_v49 = vld [vmem:[#allocation5 + $0x144] ss:$8 sps:$4 sm:$0xff]   ;;  %v3495_v50 = vld [vmem:[%s4306_s26 + $0x40] ss:$16 sps:$4 sm:$0xff]   ;;  %v3501_v53 = vld [vmem:[#allocation5 + $0x154] ss:$8 sps:$4 sm:$0xff]  }
 0x104   : > { %1189 = vmatpush1.bf16.msra.mxu0 %v3441_v9  ;;  %v3502_v52 = vld [vmem:[%s4306_s26 + $0x64] ss:$16 sps:$4 sm:$0xff]   ;;  %v3499_v54 = vld [vmem:[#allocation5 + $0x150] ss:$8 sps:$4 sm:$0xff]   ;;  %v3505_v57 = vld [vmem:[#allocation5 + $0x160] ss:$8 sps:$4 sm:$0xff]  }
 0x105   : > { %1190 = vmatprep.subr.bf16.mxu0 %v3442_v10  ;;  %v3507_v55 = vld [vmem:[#allocation5 + $0x164] ss:$8 sps:$4 sm:$0xff]   ;;  %v3504_v56 = vld [vmem:[%s4306_s26 + $0x60] ss:$16 sps:$4 sm:$0xff]   ;;  %v3510_v59 = vld [vmem:[#allocation5 + $0x174] ss:$8 sps:$4 sm:$0xff]  }
 0x106   : > { %3017 = vmatpush3.bf16.msra.mxu1 %v3572_v39  ;;  %v3511_v58 = vld [vmem:[%s4306_s26 + $0x84] ss:$16 sps:$4 sm:$0xff]   ;;  %v3508_v60 = vld [vmem:[#allocation5 + $0x170] ss:$8 sps:$4 sm:$0xff]   ;;  %v3514_v63 = vld [vmem:[#allocation5 + $0x180] ss:$8 sps:$4 sm:$0xff]  }
 0x107   : > { %3018 = vmatprep.subr.bf16.mxu1 %v3573_v43  ;;  %v3516_v61 = vld [vmem:[#allocation5 + $0x184] ss:$8 sps:$4 sm:$0xff]   ;;  %v3513_v62 = vld [vmem:[%s4306_s26 + $0x80] ss:$16 sps:$4 sm:$0xff]   ;;  %v3519_v1 = vld [vmem:[#allocation5 + $0x194] ss:$8 sps:$4 sm:$0xff]  }
 0x108   : > { %1191 = vmatpush1.bf16.msra.mxu0 %v3444_v11  ;;  %v3520_v0 = vld [vmem:[%s4306_s26 + $0xa4] ss:$16 sps:$4 sm:$0xff]   ;;  %v3517_v2 = vld [vmem:[#allocation5 + $0x190] ss:$8 sps:$4 sm:$0xff]   ;;  %v3523_v5 = vld [vmem:[#allocation5 + $0x1a0] ss:$8 sps:$4 sm:$0xff]  }
 0x109   : > { %1192 = vmatprep.subr.bf16.mxu0 %v3445_v12  ;;  %v3525_v3 = vld [vmem:[#allocation5 + $0x1a4] ss:$8 sps:$4 sm:$0xff]   ;;  %v3522_v4 = vld [vmem:[%s4306_s26 + $0xa0] ss:$16 sps:$4 sm:$0xff]   ;;  %v3528_v7 = vld [vmem:[#allocation5 + $0x1b4] ss:$8 sps:$4 sm:$0xff]  }
 0x10a   : > { %3019 = vmatpush3.bf16.msra.mxu1 %v3573_v43  ;;  %v3529_v6 = vld [vmem:[%s4306_s26 + $0xc4] ss:$16 sps:$4 sm:$0xff]   ;;  %v3526_v8 = vld [vmem:[#allocation5 + $0x1b0] ss:$8 sps:$4 sm:$0xff]   ;;  %v3532_v11 = vld [vmem:[#allocation5 + $0x1c0] ss:$8 sps:$4 sm:$0xff]  }
 0x10b   : > { %3020 = vmatprep.subr.bf16.mxu1 %v3574_v47  ;;  %v3534_v9 = vld [vmem:[#allocation5 + $0x1c4] ss:$8 sps:$4 sm:$0xff]   ;;  %v3531_v10 = vld [vmem:[%s4306_s26 + $0xc0] ss:$16 sps:$4 sm:$0xff]   ;;  %v3537_v13 = vld [vmem:[#allocation5 + $0x1d4] ss:$8 sps:$4 sm:$0xff]  }
 0x10c   : > { %1193 = vmatpush1.bf16.msra.mxu0 %v3447_v14  ;;  %v3538_v12 = vld [vmem:[%s4306_s26 + $0xe4] ss:$16 sps:$4 sm:$0xff]   ;;  %v3535_v14 = vld [vmem:[#allocation5 + $0x1d0] ss:$8 sps:$4 sm:$0xff]   ;;  %s4675_s20 = sld [smem:[#allocation27_spill]]  ;;  %s2760_s17 = sshll.u32 %s4302_s14, 7 }
 0x10d   : > { %1194 = vmatprep.subr.bf16.mxu0 %v3448_v15  ;;  %v3543_v15 = vld [vmem:[#allocation5 + $0x1e4] ss:$8 sps:$4 sm:$0xff]   ;;  %v3577_v38 = vld [vmem:[#allocation7 + $0x30] sm:$0xff]   ;;  %v3578_v39 = vld [vmem:[#allocation7 + $0x38] sm:$0xff]   ;;  %s4555_s13 = scalar_lea.vmem [#allocation16], %s2760_s17  ;;  %s2917_s1 = sshll.u32 %s4042_s19, 11 }
 0x10e   : > { %3021 = vmatpush3.bf16.msra.mxu1 %v3574_v47  ;;  %s2584_s19 = scalar_lea.sflag [#allocation4], %s4302_s14  ;;  %p4678_p1 = scmp.ne.s32.totalorder %s4660_s6, 0 }
 0x110   : > { %1195 = vmatpush1.bf16.msra.mxu0 %v3450_v16  ;;  %v3540_v16 = vld [vmem:[%s4306_s26 + $0xe0] ss:$16 sps:$4 sm:$0xff]  }
 0x111   : > { %1196 = vmatprep.subr.bf16.mxu0 %v3451_v17  ;;  %v3541_v17 = vld [vmem:[#allocation5 + $0x1e0] ss:$8 sps:$4 sm:$0xff]  }
 0x114   : > { %1197 = vmatpush1.bf16.msra.mxu0 %v3453_v18  ;;  %v3549_v18 = vld [vmem:[%s4306_s26 + $0xc] ss:$16 sps:$4 sm:$0xff]  }
 0x115   : > { %1198 = vmatprep.subr.bf16.mxu0 %v3454_v19  ;;  %v3546_v19 = vld [vmem:[#allocation5 + $0x1f4] ss:$8 sps:$4 sm:$0xff]  }
 0x118   : > { %1199 = vmatpush1.bf16.msra.mxu0 %v3456_v20  ;;  %v3544_v20 = vld [vmem:[#allocation5 + $0x1f0] ss:$8 sps:$4 sm:$0xff]  }
 0x119   : > { %1200 = vmatprep.subr.bf16.mxu0 %v3457_v21  ;;  %v3547_v21 = vld [vmem:[%s4306_s26 + $0x8] ss:$16 sps:$4 sm:$0xff]  }
 0x11c   : > { %1201 = vmatpush1.bf16.msra.mxu0 %v3459_v22  ;;  %v3550_v22 = vld [vmem:[%s4306_s26 + $0x2c] ss:$16 sps:$4 sm:$0xff]  }
 0x11d   : > { %1202 = vmatprep.subr.bf16.mxu0 %v3460_v23  ;;  %v3552_v23 = vld [vmem:[%s4306_s26 + $0x28] ss:$16 sps:$4 sm:$0xff]  }
 0x120   : > { %1203 = vmatpush1.bf16.msra.mxu0 %v3462_v24  ;;  %v3553_v24 = vld [vmem:[%s4306_s26 + $0x4c] ss:$16 sps:$4 sm:$0xff]  }
 0x121   : > { %1204 = vmatprep.subr.bf16.mxu0 %v3463_v25  ;;  %v3555_v25 = vld [vmem:[%s4306_s26 + $0x48] ss:$16 sps:$4 sm:$0xff]  }
 0x124   : > { %1205 = vmatpush1.bf16.msra.mxu0 %v3465_v26  ;;  %v3556_v26 = vld [vmem:[%s4306_s26 + $0x6c] ss:$16 sps:$4 sm:$0xff]  }
 0x125   : > { %1206 = vmatprep.subr.bf16.mxu0 %v3466_v27  ;;  %v3558_v27 = vld [vmem:[%s4306_s26 + $0x68] ss:$16 sps:$4 sm:$0xff]  }
 0x128   : > { %1207 = vmatpush1.bf16.msra.mxu0 %v3468_v28  ;;  %v3559_v28 = vld [vmem:[%s4306_s26 + $0x8c] ss:$16 sps:$4 sm:$0xff]  }
 0x129   : > { %1208 = vmatprep.subr.bf16.mxu0 %v3469_v29  ;;  %v3561_v29 = vld [vmem:[%s4306_s26 + $0x88] ss:$16 sps:$4 sm:$0xff]  }
 0x12c   : > { %1209 = vmatpush1.bf16.msra.mxu0 %v3471_v30  ;;  %v3562_v30 = vld [vmem:[%s4306_s26 + $0xac] ss:$16 sps:$4 sm:$0xff]  }
 0x12d   : > { %1210 = vmatprep.subr.bf16.mxu0 %v3472_v31  ;;  %v3564_v31 = vld [vmem:[%s4306_s26 + $0xa8] ss:$16 sps:$4 sm:$0xff]  }
 0x130   : > { %1211 = vmatpush1.bf16.msra.mxu0 %v3474_v32  ;;  %v3565_v32 = vld [vmem:[%s4306_s26 + $0xcc] ss:$16 sps:$4 sm:$0xff]  }
 0x131   : > { %1293 = vmatprep.subr.bf16.mxu0 %v3480_v33  ;;  %v3567_v33 = vld [vmem:[%s4306_s26 + $0xc8] ss:$16 sps:$4 sm:$0xff]  }
 0x133   : > { %1213 = vmatmul.mubr.bf16.vlgmr.msra.gmra.mrb[0].mxu0 %v3475_v34  ;;  %v3568_v34 = vld [vmem:[%s4306_s26 + $0xec] ss:$16 sps:$4 sm:$0xff]  }
 0x134   : > { %1294 = vmatpush1.bf16.msra.mxu0 %v3478_v35  ;;  %1222 = vmatprep.mubr.bf16.mxu0 %v3484_v37  ;;  %v3570_v35 = vld [vmem:[%s4306_s26 + $0xe8] ss:$16 sps:$4 sm:$0xff]  }
 0x135   : > { %1295 = vmatprep.subr.bf16.mxu0 %v3483_v36  ;;  %v3575_v36 = vld [vmem:[#allocation7 + $0x20] sm:$0xff]   ;;  %v3576_v37 = vld [vmem:[#allocation7 + $0x28] sm:$0xff]  }
 0x136   : > { %3022 = vmatprep.subr.bf16.mxu1 %v3575_v36 }
 0x137   : > { %3023 = vmatpush3.bf16.msra.mxu1 %v3575_v36  ;;  %v3583_v36 = vld [vmem:[#allocation8 + $0x20] sm:$0xff]  }
 0x138   : > { %1296 = vmatpush1.bf16.msra.mxu0 %v3481_v40  ;;  %3024 = vmatprep.subr.bf16.mxu1 %v3576_v37  ;;  %v3579_v40 = vld [vmem:[#allocation8] sm:$0xff]  }
 0x139   : > { %1297 = vmatprep.subr.bf16.mxu0 %v3489_v41  ;;  %v690_v41 = vlaneseq }
 0x13b   : > { %1223 = vmatmul.mubr.bf16.gmra.mrb[4].mxu0 %v3486_v42  ;;  %3025 = vmatpush3.bf16.msra.mxu1 %v3576_v37  ;;  %v691_v42 = vshrl.u32 %v690_v41, 7 }
 0x13c   : > { %1298 = vmatpush1.bf16.msra.mxu0 %v3487_v44  ;;  %1232 = vmatprep.mubr.bf16.mxu0 %v3493_v45  ;;  %v688_v44 = vld [vmem:[%s4630_s2] sm:$0x3] }
 0x13d   : > { %1299 = vmatprep.subr.bf16.mxu0 %v3492_v46  ;;  %3026 = vmatprep.subr.bf16.mxu1 %v3577_v38  ;;  %v692_v43 = vsub.s32 0, %v691_v42  ;;  %v696_v45 = vsub.s32 1, %v691_v42 }
 0x13f   : > { %3027 = vmatpush3.bf16.msra.mxu1 %v3577_v38  ;;  %v4363_v46 = vrot.slane %v688_v44, %v692_v43  ;;  %v4365_v47 = vrot.slane %v688_v44, %v696_v45  ;;  %v3584_v43 = vld [vmem:[#allocation8 + $0x28] sm:$0xff]  }
 0x140   : > { %1300 = vmatpush1.bf16.msra.mxu0 %v3490_v48  ;;  %3028 = vmatprep.subr.bf16.mxu1 %v3578_v39 }
 0x141   : > { %1301 = vmatprep.subr.bf16.mxu0 %v3498_v49 }
 0x143   : > { %1233 = vmatmul.mubr.bf16.gmra.mrb[8].mxu0 %v3495_v50  ;;  %3029 = vmatpush3.bf16.msra.mxu1 %v3578_v39 }
 0x144   : > { %1302 = vmatpush1.bf16.msra.mxu0 %v3496_v51  ;;  %1242 = vmatprep.mubr.bf16.mxu0 %v3502_v52 }
 0x145   : > { %1303 = vmatprep.subr.bf16.mxu0 %v3501_v53  ;;  %3046 = vmatprep.subr.bf16.mxu1 %v3579_v40 }
 0x148   : > { %1304 = vmatpush1.bf16.msra.mxu0 %v3499_v54 }
 0x149   : > { %1305 = vmatprep.subr.bf16.mxu0 %v3507_v55 }
 0x14b   : > { %1243 = vmatmul.mubr.bf16.gmra.mrb[12].mxu0 %v3504_v56 }
 0x14c   : > { %1306 = vmatpush1.bf16.msra.mxu0 %v3505_v57  ;;  %1252 = vmatprep.mubr.bf16.mxu0 %v3511_v58 }
 0x14d   : > { %1307 = vmatprep.subr.bf16.mxu0 %v3510_v59 }
 0x150   : > { %1308 = vmatpush1.bf16.msra.mxu0 %v3508_v60 }
 0x151   : > { %1309 = vmatprep.subr.bf16.mxu0 %v3516_v61 }
 0x153   : > { %1253 = vmatmul.mubr.bf16.gmra.mrb[16].mxu0 %v3513_v62 }
 0x154   : > { %1310 = vmatpush1.bf16.msra.mxu0 %v3514_v63  ;;  %1262 = vmatprep.mubr.bf16.mxu0 %v3520_v0 }
 0x155   : > { %1311 = vmatprep.subr.bf16.mxu0 %v3519_v1 }
 0x158   : > { %1312 = vmatpush1.bf16.msra.mxu0 %v3517_v2 }
 0x159   : > { %1313 = vmatprep.subr.bf16.mxu0 %v3525_v3 }
 0x15b   : > { %1263 = vmatmul.mubr.bf16.gmra.mrb[20].mxu0 %v3522_v4 }
 0x15c   : > { %1314 = vmatpush1.bf16.msra.mxu0 %v3523_v5  ;;  %1272 = vmatprep.mubr.bf16.mxu0 %v3529_v6 }
 0x15d   : > { %1315 = vmatprep.subr.bf16.mxu0 %v3528_v7 }
 0x160   : > { %1316 = vmatpush1.bf16.msra.mxu0 %v3526_v8 }
 0x161   : > { %1317 = vmatprep.subr.bf16.mxu0 %v3534_v9 }
 0x163   : > { %1273 = vmatmul.mubr.bf16.gmra.mrb[24].mxu0 %v3531_v10 }
 0x164   : > { %1318 = vmatpush1.bf16.msra.mxu0 %v3532_v11  ;;  %1282 = vmatprep.mubr.bf16.mxu0 %v3538_v12  ;;  %v3580_v11 = vld [vmem:[#allocation8 + $0x8] sm:$0xff]  }
 0x165   : > { %1319 = vmatprep.subr.bf16.mxu0 %v3537_v13 }
 0x168   : > { %1320 = vmatpush1.bf16.msra.mxu0 %v3535_v14 }
 0x169   : > { %1321 = vmatprep.subr.bf16.mxu0 %v3543_v15 }
 0x16b   : > { %1283 = vmatmul.mubr.bf16.gmra.mrb[28].mxu0 %v3540_v16 }
 0x16c   : > { %1322 = vmatpush1.bf16.msra.mxu0 %v3541_v17  ;;  %1325 = vmatprep.mubr.bf16.mxu0 %v3549_v18 }
 0x16d   : > { %1323 = vmatprep.subr.bf16.mxu0 %v3546_v19 }
 0x170   : > { %1324 = vmatpush1.bf16.msra.mxu0 %v3544_v20  ;;  %v3581_v20 = vld [vmem:[#allocation8 + $0x10] sm:$0xff]  }
 0x173   : > { %1326 = vmatmul.mubr.bf16.vlgmr.msra.gmra.mrb[0].mxu0 %v3547_v21 }
 0x174   : > { %1335 = vmatprep.mubr.bf16.mxu0 %v3550_v22 }
 0x17b   : > { %1336 = vmatmul.mubr.bf16.gmra.mrb[4].mxu0 %v3552_v23 }
 0x17c   : > { %1345 = vmatprep.mubr.bf16.mxu0 %v3553_v24 }
 0x183   : > { %1346 = vmatmul.mubr.bf16.gmra.mrb[8].mxu0 %v3555_v25 }
 0x184   : > { %1355 = vmatprep.mubr.bf16.mxu0 %v3556_v26 }
 0x18b   : > { %1356 = vmatmul.mubr.bf16.gmra.mrb[12].mxu0 %v3558_v27  ;;  %v3582_v27 = vld [vmem:[#allocation8 + $0x18] sm:$0xff]  }
 0x18c   : > { %1365 = vmatprep.mubr.bf16.mxu0 %v3559_v28 }
 0x193   : > { %1366 = vmatmul.mubr.bf16.gmra.mrb[16].mxu0 %v3561_v29 }
 0x194   : > { %1375 = vmatprep.mubr.bf16.mxu0 %v3562_v30 }
 0x19b   : > { %1376 = vmatmul.mubr.bf16.gmra.mrb[20].mxu0 %v3564_v31 }
 0x19c   : > { %1385 = vmatprep.mubr.bf16.mxu0 %v3565_v32 }
 0x1a3   : > { %1386 = vmatmul.mubr.bf16.gmra.mrb[24].mxu0 %v3567_v33 }
 0x1a4   : > { %1395 = vmatprep.mubr.bf16.mxu0 %v3568_v34 }
 0x1ab   : > { %1396 = vmatmul.mubr.bf16.gmra.mrb[28].mxu0 %v3570_v35 }
 0x246   : > { %v1327_v48 = vpop.f32.mrb[0].mxu0 }
 0x247   : > { %v3222_v49 = vadd.f32 %v1327_v48, %v4363_v46  ;;  %v1329_v50 = vpop.f32.mrb[1].mxu0 }
 0x248   : > { %v3223_v51 = vadd.f32 %v1329_v50, %v4365_v47  ;;  %v1331_v52 = vpop.f32.mrb[2].mxu0 }
 0x249   : > { %v3224_v53 = vadd.f32 %v1331_v52, %v4363_v46  ;;  %v1333_v54 = vpop.f32.mrb[3].mxu0  ;;  %v1406_v56 = vmax.f32 %v3222_v49, 0.0 }
 0x24a   : > { %v3225_v55 = vadd.f32 %v1333_v54, %v4365_v47  ;;  %v1407_v58 = vmax.f32 %v3223_v51, 0.0 }
 0x24b   : > { %v1408_v57 = vmax.f32 %v3224_v53, 0.0 }
 0x24c   : > { %v1409_v59 = vmax.f32 %v3225_v55, 0.0 }
 0x24d   : > { %v1438_v60 = vpack.c.bf16 %v1408_v57, %v1406_v56 }
 0x24e   : > { %v4371_v61 = vpack.c.bf16 %v1409_v59, %v1407_v58  ;;  %v1337_v62 = vpop.f32.mrb[4].mxu0 }
 0x24f   : > { %v3226_v63 = vadd.f32 %v1337_v62, %v4363_v46  ;;  %v1339_v0 = vpop.f32.mrb[5].mxu0  ;;  %3030 = vmatprep.mubr.bf16.mxu1 %v1438_v60 }
 0x250   : > { %v3227_v1 = vadd.f32 %v1339_v0, %v4365_v47  ;;  %v1341_v2 = vpop.f32.mrb[6].mxu0 }
 0x251   : > { %v3228_v3 = vadd.f32 %v1341_v2, %v4363_v46  ;;  %v1343_v4 = vpop.f32.mrb[7].mxu0  ;;  %v1410_v6 = vmax.f32 %v3226_v63, 0.0 }
 0x252   : > { %v3229_v5 = vadd.f32 %v1343_v4, %v4365_v47  ;;  %v1411_v8 = vmax.f32 %v3227_v1, 0.0 }
 0x253   : > { %v1412_v7 = vmax.f32 %v3228_v3, 0.0 }
 0x254   : > { %v1413_v9 = vmax.f32 %v3229_v5, 0.0 }
 0x255   : > { %v1439_v10 = vpack.c.bf16 %v1412_v7, %v1410_v6 }
 0x256   : > { %v4377_v12 = vpack.c.bf16 %v1413_v9, %v1411_v8  ;;  %v1347_v13 = vpop.f32.mrb[8].mxu0 }
 0x257   : > { %v3230_v14 = vadd.f32 %v1347_v13, %v4363_v46  ;;  %v1349_v15 = vpop.f32.mrb[9].mxu0  ;;  %3031 = vmatmul.mubr.bf16.vlgmr.msra.gmra.mrb[0].mxu1 %v1439_v10 }
 0x258   : > { %v3231_v16 = vadd.f32 %v1349_v15, %v4365_v47  ;;  %v1351_v17 = vpop.f32.mrb[10].mxu0  ;;  %3047 = vmatpush3.bf16.msra.mxu1 %v3579_v40 }
 0x259   : > { %v3232_v18 = vadd.f32 %v1351_v17, %v4363_v46  ;;  %v1353_v19 = vpop.f32.mrb[11].mxu0  ;;  %3048 = vmatprep.subr.bf16.mxu1 %v3580_v11  ;;  %v1414_v22 = vmax.f32 %v3230_v14, 0.0 }
 0x25a   : > { %v3233_v21 = vadd.f32 %v1353_v19, %v4365_v47  ;;  %v1415_v24 = vmax.f32 %v3231_v16, 0.0 }
 0x25b   : > { %v1416_v23 = vmax.f32 %v3232_v18, 0.0 }
 0x25c   : > { %v1417_v25 = vmax.f32 %v3233_v21, 0.0  ;;  %3049 = vmatpush3.bf16.msra.mxu1 %v3580_v11 }
 0x25d   : > { %v1440_v26 = vpack.c.bf16 %v1416_v23, %v1414_v22  ;;  %3050 = vmatprep.subr.bf16.mxu1 %v3581_v20 }
 0x25e   : > { %v4383_v28 = vpack.c.bf16 %v1417_v25, %v1415_v24  ;;  %v1357_v29 = vpop.f32.mrb[12].mxu0 }
 0x25f   : > { %v3234_v30 = vadd.f32 %v1357_v29, %v4363_v46  ;;  %v1359_v31 = vpop.f32.mrb[13].mxu0  ;;  %3034 = vmatprep.mubr.bf16.mxu1 %v1440_v26 }
 0x260   : > { %v3235_v32 = vadd.f32 %v1359_v31, %v4365_v47  ;;  %v1361_v33 = vpop.f32.mrb[14].mxu0  ;;  %3051 = vmatpush3.bf16.msra.mxu1 %v3581_v20 }
 0x261   : > { %v3236_v34 = vadd.f32 %v1361_v33, %v4363_v46  ;;  %v1363_v35 = vpop.f32.mrb[15].mxu0  ;;  %3052 = vmatprep.subr.bf16.mxu1 %v3582_v27  ;;  %v1418_v38 = vmax.f32 %v3234_v30, 0.0 }
 0x262   : > { %v3237_v37 = vadd.f32 %v1363_v35, %v4365_v47  ;;  %v1419_v40 = vmax.f32 %v3235_v32, 0.0 }
 0x263   : > { %v1420_v39 = vmax.f32 %v3236_v34, 0.0 }
 0x264   : > { %v1421_v41 = vmax.f32 %v3237_v37, 0.0  ;;  %3053 = vmatpush3.bf16.msra.mxu1 %v3582_v27 }
 0x265   : > { %v1441_v42 = vpack.c.bf16 %v1420_v39, %v1418_v38  ;;  %3054 = vmatprep.subr.bf16.mxu1 %v3583_v36 }
 0x266   : > { %v4389_v44 = vpack.c.bf16 %v1421_v41, %v1419_v40  ;;  %v1367_v45 = vpop.f32.mrb[16].mxu0 }
 0x267   : > { %v3238_v48 = vadd.f32 %v1367_v45, %v4363_v46  ;;  %v1369_v49 = vpop.f32.mrb[17].mxu0  ;;  %3035 = vmatmul.mubr.bf16.gmra.mrb[4].mxu1 %v1441_v42  ;;  %v3585_v42 = vld [vmem:[#allocation8 + $0x30] sm:$0xff]   ;;  %v3587_v45 = vld [vmem:[#allocation10] sm:$0xff]  }
 0x268   : > { %v3239_v50 = vadd.f32 %v1369_v49, %v4365_v47  ;;  %v1371_v51 = vpop.f32.mrb[18].mxu0  ;;  %3055 = vmatpush3.bf16.msra.mxu1 %v3583_v36  ;;  %v4426_v49 = vld [vmem:[#allocation13 + $0x18] sm:$0xff]  }
 0x269   : > { %v3240_v52 = vadd.f32 %v1371_v51, %v4363_v46  ;;  %v1373_v53 = vpop.f32.mrb[19].mxu0  ;;  %3056 = vmatprep.subr.bf16.mxu1 %v3584_v43  ;;  %v1422_v55 = vmax.f32 %v3238_v48, 0.0  ;;  %v4417_v48 = vld [vmem:[#allocation13 + $0x8] sm:$0xff]  }
 0x26a   : > { %v3241_v54 = vadd.f32 %v1373_v53, %v4365_v47  ;;  %v1423_v57 = vmax.f32 %v3239_v50, 0.0  ;;  %v4430_v50 = vld [vmem:[#allocation13 + $0x20] sm:$0xff]   ;;  %v4434_v51 = vld [vmem:[#allocation13 + $0x28] sm:$0xff]  }
 0x26b   : > { %v1424_v56 = vmax.f32 %v3240_v52, 0.0  ;;  %v4442_v52 = vld [vmem:[%s4672_s28] ss:$0 sm:$0xff]  ;;  %s4676_s28 = sld [smem:[#allocation28_spill]] }
 0x26c   : > { %v1425_v58 = vmax.f32 %v3241_v54, 0.0  ;;  %3057 = vmatpush3.bf16.msra.mxu1 %v3584_v43  ;;  %v3586_v43 = vld [vmem:[#allocation8 + $0x38] sm:$0xff]  }
 0x26d   : > { %v1442_v59 = vpack.c.bf16 %v1424_v56, %v1422_v55  ;;  %3058 = vmatprep.subr.bf16.mxu1 %v3585_v42 }
 0x26e   : > { %v4395_v60 = vpack.c.bf16 %v1425_v58, %v1423_v57  ;;  %v1377_v62 = vpop.f32.mrb[20].mxu0 }
 0x26f   : > { %v3242_v63 = vadd.f32 %v1377_v62, %v4363_v46  ;;  %v1379_v0 = vpop.f32.mrb[21].mxu0  ;;  %3038 = vmatprep.mubr.bf16.mxu1 %v1442_v59 }
 0x270   : > { %v3243_v1 = vadd.f32 %v1379_v0, %v4365_v47  ;;  %v1381_v2 = vpop.f32.mrb[22].mxu0  ;;  %3059 = vmatpush3.bf16.msra.mxu1 %v3585_v42 }
 0x271   : > { %v3244_v3 = vadd.f32 %v1381_v2, %v4363_v46  ;;  %v1383_v4 = vpop.f32.mrb[23].mxu0  ;;  %v1426_v6 = vmax.f32 %v3242_v63, 0.0  ;;  %3060 = vmatprep.subr.bf16.mxu1 %v3586_v43 }
 0x272   : > { %v3245_v5 = vadd.f32 %v1383_v4, %v4365_v47  ;;  %v1427_v8 = vmax.f32 %v3243_v1, 0.0 }
 0x273   : > { %v1428_v7 = vmax.f32 %v3244_v3, 0.0 }
 0x274   : > { %v1429_v9 = vmax.f32 %v3245_v5, 0.0  ;;  %3061 = vmatpush3.bf16.msra.mxu1 %v3586_v43  ;;  %v3588_v5 = vld [vmem:[#allocation10 + $0x8] sm:$0xff]  }
 0x275   : > { %v1443_v10 = vpack.c.bf16 %v1428_v7, %v1426_v6  ;;  %3078 = vmatprep.subr.bf16.mxu1 %v3587_v45  ;;  %v3589_v6 = vld [vmem:[#allocation10 + $0x10] sm:$0xff]  }
 0x276   : > { %v4401_v11 = vpack.c.bf16 %v1429_v9, %v1427_v8  ;;  %v1387_v13 = vpop.f32.mrb[24].mxu0 }
 0x277   : > { %v3246_v14 = vadd.f32 %v1387_v13, %v4363_v46  ;;  %v1389_v15 = vpop.f32.mrb[25].mxu0  ;;  %3039 = vmatmul.mubr.bf16.gmra.mrb[8].mxu1 %v1443_v10  ;;  %v3590_v10 = vld [vmem:[#allocation10 + $0x18] sm:$0xff]  }
 0x278   : > { %v3247_v16 = vadd.f32 %v1389_v15, %v4365_v47  ;;  %v1391_v17 = vpop.f32.mrb[26].mxu0 }
 0x279   : > { %v3248_v18 = vadd.f32 %v1391_v17, %v4363_v46  ;;  %v1393_v19 = vpop.f32.mrb[27].mxu0  ;;  %v1430_v21 = vmax.f32 %v3246_v14, 0.0 }
 0x27a   : > { %v3249_v20 = vadd.f32 %v1393_v19, %v4365_v47  ;;  %v1431_v23 = vmax.f32 %v3247_v16, 0.0 }
 0x27b   : > { %v1432_v22 = vmax.f32 %v3248_v18, 0.0 }
 0x27c   : > { %v1433_v24 = vmax.f32 %v3249_v20, 0.0  ;;  %v3591_v20 = vld [vmem:[#allocation10 + $0x20] sm:$0xff]  }
 0x27d   : > { %v1444_v25 = vpack.c.bf16 %v1432_v22, %v1430_v21 }
 0x27e   : > { %v4407_v26 = vpack.c.bf16 %v1433_v24, %v1431_v23  ;;  %v1397_v27 = vpop.f32.mrb[28].mxu0 }
 0x27f   : > { %v3250_v29 = vadd.f32 %v1397_v27, %v4363_v46  ;;  %v1399_v30 = vpop.f32.mrb[29].mxu0  ;;  %3042 = vmatprep.mubr.bf16.mxu1 %v1444_v25  ;;  %v3592_v25 = vld [vmem:[#allocation10 + $0x28] sm:$0xff]   ;;  %v3593_v27 = vld [vmem:[#allocation10 + $0x30] sm:$0xff]  }
 0x280   : > { %v3251_v31 = vadd.f32 %v1399_v30, %v4365_v47  ;;  %v1401_v32 = vpop.f32.mrb[30].mxu0 }
 0x281   : > { %v3252_v33 = vadd.f32 %v1401_v32, %v4363_v46  ;;  %v1403_v34 = vpop.f32.mrb[31].mxu0  ;;  %v1434_v36 = vmax.f32 %v3250_v29, 0.0  ;;  %v4415_v46 = vld [vmem:[#allocation13] sm:$0xff]   ;;  %v3594_v32 = vld [vmem:[#allocation10 + $0x38] sm:$0xff]  }
 0x282   : > { %v3253_v35 = vadd.f32 %v1403_v34, %v4365_v47  ;;  %v1435_v38 = vmax.f32 %v3251_v31, 0.0  ;;  %3174 = vmatprep.subr.bf16.mxu0 %v4415_v46  ;;  %v4422_v47 = vld [vmem:[#allocation13 + $0x10] sm:$0xff]  }
 0x283   : > { %v1436_v37 = vmax.f32 %v3252_v33, 0.0  ;;  %3175 = vmatpush3.bf16.msra.mxu0 %v4415_v46 }
 0x284   : > { %v1437_v39 = vmax.f32 %v3253_v35, 0.0  ;;  %3176 = vmatprep.subr.bf16.mxu0 %v4417_v48 }
 0x285   : > { %v1445_v40 = vpack.c.bf16 %v1436_v37, %v1434_v36 }
 0x286   : > { %v4413_v41 = vpack.c.bf16 %v1437_v39, %v1435_v38 }
 0x287   : > { %3043 = vmatmul.mubr.bf16.gmra.mrb[12].mxu1 %v1445_v40  ;;  %3177 = vmatpush3.bf16.msra.mxu0 %v4417_v48 }
 0x288   : > { %3178 = vmatprep.subr.bf16.mxu0 %v4422_v47 }
 0x28b   : > { %3179 = vmatpush3.bf16.msra.mxu0 %v4422_v47 }
 0x28c   : > { %3180 = vmatprep.subr.bf16.mxu0 %v4426_v49 }
 0x28f   : > { %3181 = vmatpush3.bf16.msra.mxu0 %v4426_v49 }
 0x290   : > { %3182 = vmatprep.subr.bf16.mxu0 %v4430_v50 }
 0x293   : > { %3183 = vmatpush3.bf16.msra.mxu0 %v4430_v50 }
 0x294   : > { %3184 = vmatprep.subr.bf16.mxu0 %v4434_v51 }
 0x297   : > { %3185 = vmatpush3.bf16.msra.mxu0 %v4434_v51 }
 0x32a   : > { %v3032_v53 = vpop.f32.mrb[0].mxu1 }
 0x32b   : > { %v1568_v54 = vadd.f32 %v3032_v53, %v4442_v52  ;;  %v1559_v55 = vpop.f32.mrb[1].mxu1 }
 0x32c   : > { %v1560_v56 = vadd.f32 %v4442_v52, %v1559_v55  ;;  %v3033_v57 = vpop.f32.mrb[2].mxu1 }
 0x32d   : > { %v1571_v58 = vadd.f32 %v3033_v57, %v4442_v52  ;;  %v1562_v59 = vpop.f32.mrb[3].mxu1  ;;  %v1624_v63 = vmax.f32 %v1568_v54, 0.0 }
 0x32e   : > { %v1563_v62 = vadd.f32 %v4442_v52, %v1562_v59  ;;  %v1622_v1 = vmax.f32 %v1560_v56, 0.0 }
 0x32f   : > { %v1625_v0 = vmax.f32 %v1571_v58, 0.0 }
 0x330   : > { %v1623_v2 = vmax.f32 %v1563_v62, 0.0 }
 0x331   : > { %v1639_v3 = vpack.c.bf16 %v1625_v0, %v1624_v63 }
 0x332   : > { %v1638_v4 = vpack.c.bf16 %v1623_v2, %v1622_v1 }
 0x334   : > { %3062 = vmatprep.mubr.bf16.mxu1 %v1638_v4 }
 0x335   : > { %3063 = vmatmul.mubr.bf16.vlgmr.msra.gmra.mrb[16].mxu1 %v1639_v3 }
 0x336   : > { %3079 = vmatpush3.bf16.msra.mxu1 %v3587_v45 }
 0x337   : > { %3080 = vmatprep.subr.bf16.mxu1 %v3588_v5 }
 0x33a   : > { %v3036_v7 = vpop.f32.mrb[4].mxu1  ;;  %3081 = vmatpush3.bf16.msra.mxu1 %v3588_v5  ;;  %v3610_v5 = vld [vmem:[#allocation11 + $0x38] sm:$0xff]  }
 0x33b   : > { %v1584_v8 = vadd.f32 %v3036_v7, %v4442_v52  ;;  %v1575_v9 = vpop.f32.mrb[5].mxu1  ;;  %3082 = vmatprep.subr.bf16.mxu1 %v3589_v6 }
 0x33c   : > { %v1576_v13 = vadd.f32 %v4442_v52, %v1575_v9  ;;  %v3037_v14 = vpop.f32.mrb[6].mxu1 }
 0x33d   : > { %v1587_v15 = vadd.f32 %v3037_v14, %v4442_v52  ;;  %v1578_v16 = vpop.f32.mrb[7].mxu1  ;;  %v1628_v18 = vmax.f32 %v1584_v8, 0.0 }
 0x33e   : > { %v1579_v17 = vadd.f32 %v4442_v52, %v1578_v16  ;;  %3083 = vmatpush3.bf16.msra.mxu1 %v3589_v6  ;;  %v1626_v21 = vmax.f32 %v1576_v13, 0.0  ;;  %v2866_v6 = vld [vmem:[%s4673_s22] ss:$0 sm:$0xff]  ;;  %s2597_s22 = sshll.u32 %s4555_s13, 4  ;;  %s4581_s22 = int_to_ptr.vmem [resolvable:$true] %s2597_s22 }
 0x33f   : > { %v1629_v19 = vmax.f32 %v1587_v15, 0.0  ;;  %3084 = vmatprep.subr.bf16.mxu1 %v3590_v10  ;;  %s3845_s26 = scalar_lea.vmem %s4581_s22, 2048 }
 0x340   : > { %v1627_v22 = vmax.f32 %v1579_v17, 0.0  ;;  %p3846_p10 = scmp.ne.s32.totalorder %s4581_s22, %s3845_s26 }
 0x341   : > { %v1641_v23 = vpack.c.bf16 %v1629_v19, %v1628_v18 }
 0x342   : > { %v1640_v24 = vpack.c.bf16 %v1627_v22, %v1626_v21  ;;  %3085 = vmatpush3.bf16.msra.mxu1 %v3590_v10  ;;  %p3847_p11 = pnand %p3846_p10, %p4678_p1 }
 0x343   : > { %3086 = vmatprep.subr.bf16.mxu1 %v3591_v20 }
 0x344   : > { %3066 = vmatprep.mubr.bf16.mxu1 %v1640_v24  ;;  %p3848_p12 = pneg %p3847_p11 }
 0x345   : > { %3067 = vmatmul.mubr.bf16.gmra.mrb[20].mxu1 %v1641_v23 }
 0x346   : > { %3087 = vmatpush3.bf16.msra.mxu1 %v3591_v20 }
 0x347   : > { %3088 = vmatprep.subr.bf16.mxu1 %v3592_v25 }
 0x34a   : > { %v3040_v29 = vpop.f32.mrb[8].mxu1  ;;  %3089 = vmatpush3.bf16.msra.mxu1 %v3592_v25 }
 0x34b   : > { %v1600_v30 = vadd.f32 %v3040_v29, %v4442_v52  ;;  %v1591_v31 = vpop.f32.mrb[9].mxu1  ;;  %3090 = vmatprep.subr.bf16.mxu1 %v3593_v27 }
 0x34c   : > { %v1592_v33 = vadd.f32 %v4442_v52, %v1591_v31  ;;  %v3041_v34 = vpop.f32.mrb[10].mxu1 }
 0x34d   : > { %v1603_v35 = vadd.f32 %v3041_v34, %v4442_v52  ;;  %v1594_v36 = vpop.f32.mrb[11].mxu1  ;;  %v1632_v38 = vmax.f32 %v1600_v30, 0.0 }
 0x34e   : > { %v1595_v37 = vadd.f32 %v4442_v52, %v1594_v36  ;;  %3091 = vmatpush3.bf16.msra.mxu1 %v3593_v27  ;;  %v1630_v40 = vmax.f32 %v1592_v33, 0.0 }
 0x34f   : > { %v1633_v39 = vmax.f32 %v1603_v35, 0.0  ;;  %3092 = vmatprep.subr.bf16.mxu1 %v3594_v32 }
 0x350   : > { %v1631_v42 = vmax.f32 %v1595_v37, 0.0 }
 0x351   : > { %v1643_v43 = vpack.c.bf16 %v1633_v39, %v1632_v38 }
 0x352   : > { %v1642_v45 = vpack.c.bf16 %v1631_v42, %v1630_v40  ;;  %3093 = vmatpush3.bf16.msra.mxu1 %v3594_v32 }
 0x354   : > { %3070 = vmatprep.mubr.bf16.mxu1 %v1642_v45 }
 0x355   : > { %3071 = vmatmul.mubr.bf16.gmra.mrb[24].mxu1 %v1643_v43 }
 0x35a   : > { %v3044_v53 = vpop.f32.mrb[12].mxu1 }
 0x35b   : > { %v1616_v54 = vadd.f32 %v3044_v53, %v4442_v52  ;;  %v1607_v55 = vpop.f32.mrb[13].mxu1 }
 0x35c   : > { %v1608_v56 = vadd.f32 %v4442_v52, %v1607_v55  ;;  %v3045_v57 = vpop.f32.mrb[14].mxu1 }
 0x35d   : > { %v1619_v58 = vadd.f32 %v3045_v57, %v4442_v52  ;;  %v1610_v59 = vpop.f32.mrb[15].mxu1  ;;  %v1636_v63 = vmax.f32 %v1616_v54, 0.0 }
 0x35e   : > { %v1611_v62 = vadd.f32 %v4442_v52, %v1610_v59  ;;  %v1634_v1 = vmax.f32 %v1608_v56, 0.0  ;;  %v4468_v52 = vld [vmem:[#allocation13 + $0x30] sm:$0xff]  }
 0x35f   : > { %v1637_v0 = vmax.f32 %v1619_v58, 0.0  ;;  %3186 = vmatprep.subr.bf16.mxu0 %v4468_v52 }
 0x360   : > { %v1635_v2 = vmax.f32 %v1611_v62, 0.0  ;;  %3187 = vmatpush3.bf16.msra.mxu0 %v4468_v52 }
 0x361   : > { %v1645_v3 = vpack.c.bf16 %v1637_v0, %v1636_v63 }
 0x362   : > { %v1644_v4 = vpack.c.bf16 %v1635_v2, %v1634_v1 }
 0x364   : > { %3074 = vmatprep.mubr.bf16.mxu1 %v1644_v4 }
 0x365   : > { %3075 = vmatmul.mubr.bf16.gmra.mrb[28].mxu1 %v1645_v3 }
 0x366   : > { %3094 = vmatprep.mubr.bf16.mxu1 %v4371_v61  ;;  %v4472_v61 = vld [vmem:[#allocation13 + $0x38] sm:$0xff]  }
 0x367   : > { %3188 = vmatprep.subr.bf16.mxu0 %v4472_v61 }
 0x368   : > { %3189 = vmatpush3.bf16.msra.mxu0 %v4472_v61 }
 0x36d   : > { %3095 = vmatmul.mubr.bf16.vlgmr.msra.gmra.mrb[32].mxu1 %v4377_v12  ;;  %v3603_v12 = vld [vmem:[#allocation11] sm:$0xff]  }
 0x36e   : > { %3098 = vmatprep.mubr.bf16.mxu1 %v4383_v28  ;;  %3110 = vmatprep.subr.bf16.mxu1 %v3603_v12  ;;  %v3604_v28 = vld [vmem:[#allocation11 + $0x8] sm:$0xff]  }
 0x36f   : > { %3111 = vmatpush3.bf16.msra.mxu1 %v3603_v12 }
 0x370   : > { %3112 = vmatprep.subr.bf16.mxu1 %v3604_v28 }
 0x373   : > { %3113 = vmatpush3.bf16.msra.mxu1 %v3604_v28 }
 0x375   : > { %3099 = vmatmul.mubr.bf16.gmra.mrb[36].mxu1 %v4389_v44  ;;  %v3605_v44 = vld [vmem:[#allocation11 + $0x10] sm:$0xff]  }
 0x376   : > { %3102 = vmatprep.mubr.bf16.mxu1 %v4395_v60  ;;  %v3606_v60 = vld [vmem:[#allocation11 + $0x18] sm:$0xff]   ;;  %3114 = vmatprep.subr.bf16.mxu1 %v3605_v44 }
 0x377   : > { %3115 = vmatpush3.bf16.msra.mxu1 %v3605_v44 }
 0x378   : > { %3116 = vmatprep.subr.bf16.mxu1 %v3606_v60 }
 0x37b   : > { %3117 = vmatpush3.bf16.msra.mxu1 %v3606_v60 }
 0x37d   : > { %3103 = vmatmul.mubr.bf16.gmra.mrb[40].mxu1 %v4401_v11  ;;  %v3607_v11 = vld [vmem:[#allocation11 + $0x20] sm:$0xff]  }
 0x37e   : > { %3106 = vmatprep.mubr.bf16.mxu1 %v4407_v26  ;;  %3118 = vmatprep.subr.bf16.mxu1 %v3607_v11  ;;  %v3608_v26 = vld [vmem:[#allocation11 + $0x28] sm:$0xff]  }
 0x37f   : > { %3119 = vmatpush3.bf16.msra.mxu1 %v3607_v11 }
 0x380   : > { %3120 = vmatprep.subr.bf16.mxu1 %v3608_v26 }
 0x383   : > { %3121 = vmatpush3.bf16.msra.mxu1 %v3608_v26 }
 0x385   : > { %3107 = vmatmul.mubr.bf16.gmra.mrb[44].mxu1 %v4413_v41  ;;  %v3609_v41 = vld [vmem:[#allocation11 + $0x30] sm:$0xff]  }
 0x386   : > { %3122 = vmatprep.subr.bf16.mxu1 %v3609_v41 }
 0x387   : > { %3123 = vmatpush3.bf16.msra.mxu1 %v3609_v41 }
 0x388   : > { %3124 = vmatprep.subr.bf16.mxu1 %v3610_v5 }
 0x38b   : > { %3125 = vmatpush3.bf16.msra.mxu1 %v3610_v5  ;;  %v2875_v5 = vld [vmem:[%s4674_s18] ss:$0 sm:$0xff]  ;;  %s4677_s18 = sld [smem:[#allocation29_spill]] }
 0x391   : > { %s4579_s4 = scalar_lea.hbm %s4677_s18, %s2917_s1 }
 0x408   : > { %v3064_v7 = vpop.f32.mrb[16].mxu1 }
 0x409   : > { %v1760_v8 = vadd.f32 %v3064_v7, %v2866_v6  ;;  %v1751_v9 = vpop.f32.mrb[17].mxu1 }
 0x40a   : > { %v1752_v10 = vadd.f32 %v2866_v6, %v1751_v9  ;;  %v3065_v13 = vpop.f32.mrb[18].mxu1 }
 0x40b   : > { %v1763_v14 = vadd.f32 %v3065_v13, %v2866_v6  ;;  %v1754_v15 = vpop.f32.mrb[19].mxu1  ;;  %v1816_v17 = vmax.f32 %v1760_v8, 0.0 }
 0x40c   : > { %v1755_v16 = vadd.f32 %v2866_v6, %v1754_v15  ;;  %v1814_v19 = vmax.f32 %v1752_v10, 0.0 }
 0x40d   : > { %v1817_v18 = vmax.f32 %v1763_v14, 0.0 }
 0x40e   : > { %v1815_v20 = vmax.f32 %v1755_v16, 0.0 }
 0x40f   : > { %v2207_v21 = vpack.c.bf16 %v1817_v18, %v1816_v17 }
 0x410   : > { %v2206_v22 = vpack.c.bf16 %v1815_v20, %v1814_v19 }
 0x412   : > { %3190 = vmatprep.mubr.bf16.mxu0 %v2206_v22 }
 0x413   : > { %3191 = vmatmul.mubr.bf16.vlgmr.msra.gmra.mrb[32].mxu0 %v2207_v21 }
 0x418   : > { %v3068_v23 = vpop.f32.mrb[20].mxu1 }
 0x419   : > { %v1776_v24 = vadd.f32 %v3068_v23, %v2866_v6  ;;  %v1767_v25 = vpop.f32.mrb[21].mxu1 }
 0x41a   : > { %v1768_v27 = vadd.f32 %v2866_v6, %v1767_v25  ;;  %v3069_v29 = vpop.f32.mrb[22].mxu1 }
 0x41b   : > { %v1779_v30 = vadd.f32 %v3069_v29, %v2866_v6  ;;  %v1770_v31 = vpop.f32.mrb[23].mxu1  ;;  %v1820_v33 = vmax.f32 %v1776_v24, 0.0 }
 0x41c   : > { %v1771_v32 = vadd.f32 %v2866_v6, %v1770_v31  ;;  %v1818_v35 = vmax.f32 %v1768_v27, 0.0 }
 0x41d   : > { %v1821_v34 = vmax.f32 %v1779_v30, 0.0 }
 0x41e   : > { %v1819_v36 = vmax.f32 %v1771_v32, 0.0 }
 0x41f   : > { %v2209_v37 = vpack.c.bf16 %v1821_v34, %v1820_v33 }
 0x420   : > { %v2208_v38 = vpack.c.bf16 %v1819_v36, %v1818_v35 }
 0x422   : > { %3194 = vmatprep.mubr.bf16.mxu0 %v2208_v38 }
 0x423   : > { %3195 = vmatmul.mubr.bf16.gmra.mrb[36].mxu0 %v2209_v37 }
 0x428   : > { %v3072_v39 = vpop.f32.mrb[24].mxu1 }
 0x429   : > { %v1792_v40 = vadd.f32 %v3072_v39, %v2866_v6  ;;  %v1783_v42 = vpop.f32.mrb[25].mxu1 }
 0x42a   : > { %v1784_v43 = vadd.f32 %v2866_v6, %v1783_v42  ;;  %v3073_v45 = vpop.f32.mrb[26].mxu1 }
 0x42b   : > { %v1795_v53 = vadd.f32 %v3073_v45, %v2866_v6  ;;  %v1786_v54 = vpop.f32.mrb[27].mxu1  ;;  %v1824_v56 = vmax.f32 %v1792_v40, 0.0 }
 0x42c   : > { %v1787_v55 = vadd.f32 %v2866_v6, %v1786_v54  ;;  %v1822_v58 = vmax.f32 %v1784_v43, 0.0 }
 0x42d   : > { %v1825_v57 = vmax.f32 %v1795_v53, 0.0 }
 0x42e   : > { %v1823_v59 = vmax.f32 %v1787_v55, 0.0 }
 0x42f   : > { %v4479_v62 = vpack.c.bf16 %v1825_v57, %v1824_v56 }
 0x430   : > { %v4481_v63 = vpack.c.bf16 %v1823_v59, %v1822_v58 }
 0x438   : > { %v3076_v0 = vpop.f32.mrb[28].mxu1 }
 0x439   : > { %v1808_v1 = vadd.f32 %v3076_v0, %v2866_v6  ;;  %v1799_v2 = vpop.f32.mrb[29].mxu1 }
 0x43a   : > { %v1800_v3 = vadd.f32 %v2866_v6, %v1799_v2  ;;  %v3077_v4 = vpop.f32.mrb[30].mxu1 }
 0x43b   : > { %v1811_v12 = vadd.f32 %v3077_v4, %v2866_v6  ;;  %v1802_v28 = vpop.f32.mrb[31].mxu1  ;;  %v1828_v60 = vmax.f32 %v1808_v1, 0.0 }
 0x43c   : > { %v1803_v44 = vadd.f32 %v2866_v6, %v1802_v28  ;;  %v1826_v26 = vmax.f32 %v1800_v3, 0.0 }
 0x43d   : > { %v1829_v11 = vmax.f32 %v1811_v12, 0.0 }
 0x43e   : > { %v1827_v41 = vmax.f32 %v1803_v44, 0.0 }
 0x43f   : > { %v4486_v7 = vpack.c.bf16 %v1829_v11, %v1828_v60 }
 0x440   : > { %v4488_v8 = vpack.c.bf16 %v1827_v41, %v1826_v26  ;;  %v3096_v9 = vpop.f32.mrb[32].mxu1 }
 0x441   : > { %v1944_v10 = vadd.f32 %v3096_v9, %v2875_v5  ;;  %v1935_v13 = vpop.f32.mrb[33].mxu1 }
 0x442   : > { %v1936_v14 = vadd.f32 %v2875_v5, %v1935_v13  ;;  %v3097_v15 = vpop.f32.mrb[34].mxu1 }
 0x443   : > { %v1947_v16 = vadd.f32 %v3097_v15, %v2875_v5  ;;  %v1938_v17 = vpop.f32.mrb[35].mxu1  ;;  %v2000_v18 = vmax.f32 %v1944_v10, 0.0 }
 0x444   : > { %v1939_v6 = vadd.f32 %v2875_v5, %v1938_v17  ;;  %v1998_v20 = vmax.f32 %v1936_v14, 0.0  ;;  %v3612_v17 = vld [vmem:[#allocation14 + $0x8] sm:$0xff]  }
 0x445   : > { %v2001_v19 = vmax.f32 %v1947_v16, 0.0  ;;  %v3611_v16 = vld [vmem:[#allocation14] sm:$0xff]  }
 0x446   : > { %v1999_v21 = vmax.f32 %v1939_v6, 0.0  ;;  %3142 = vmatprep.subr.bf16.mxu1 %v3611_v16  ;;  %v3613_v6 = vld [vmem:[#allocation14 + $0x10] sm:$0xff]  }
 0x447   : > { %v2015_v22 = vpack.c.bf16 %v2001_v19, %v2000_v18  ;;  %v3614_v18 = vld [vmem:[#allocation14 + $0x18] sm:$0xff]   ;;  %v3616_v19 = vld [vmem:[#allocation14 + $0x28] sm:$0xff]  }
 0x448   : > { %v2014_v23 = vpack.c.bf16 %v1999_v21, %v1998_v20  ;;  %v3100_v24 = vpop.f32.mrb[36].mxu1  ;;  %v3617_v20 = vld [vmem:[#allocation14 + $0x30] sm:$0xff]   ;;  %v3618_v21 = vld [vmem:[#allocation14 + $0x38] sm:$0xff]  }
 0x449   : > { %v1960_v25 = vadd.f32 %v3100_v24, %v2875_v5  ;;  %v1951_v27 = vpop.f32.mrb[37].mxu1 }
 0x44a   : > { %v1952_v29 = vadd.f32 %v2875_v5, %v1951_v27  ;;  %v3101_v30 = vpop.f32.mrb[38].mxu1  ;;  %3126 = vmatprep.mubr.bf16.mxu1 %v2014_v23 }
 0x44b   : > { %v1963_v31 = vadd.f32 %v3101_v30, %v2875_v5  ;;  %v1954_v32 = vpop.f32.mrb[39].mxu1  ;;  %3127 = vmatmul.mubr.bf16.vlgmr.msra.gmra.mrb[48].mxu1 %v2015_v22  ;;  %v2004_v34 = vmax.f32 %v1960_v25, 0.0 }
 0x44c   : > { %v1955_v33 = vadd.f32 %v2875_v5, %v1954_v32  ;;  %v2002_v36 = vmax.f32 %v1952_v29, 0.0  ;;  %3143 = vmatpush3.bf16.msra.mxu1 %v3611_v16  ;;  %v4510_v32 = vld [vmem:[%s4675_s20] ss:$0 sm:$0xff]  ;;  %s3943_s20 = smov [#allocation16]  }
 0x44d   : > { %v2005_v35 = vmax.f32 %v1963_v31, 0.0  ;;  %3144 = vmatprep.subr.bf16.mxu1 %v3612_v17  ;;  %s3849_s17 = sshll.u32 %s3943_s20, 4  ;;  %s3850_s17 = int_to_ptr.vmem [resolvable:$false] %s3849_s17 }
 0x44e   : > { %v2003_v37 = vmax.f32 %v1955_v33, 0.0  ;;  %s3851_s23 = scalar_lea.vmem %s3850_s17, 4096  ;;  %p3852_p13 = scmp.lt.s32.totalorder %s4581_s22, %s3850_s17 }
 0x44f   : > { %v2017_v38 = vpack.c.bf16 %v2005_v35, %v2004_v34  ;;  %p3853_p8 = scmp.lt.s32.totalorder %s3851_s23, %s3845_s26 }
 0x450   : > { %v2016_v39 = vpack.c.bf16 %v2003_v37, %v2002_v36  ;;  %v3104_v40 = vpop.f32.mrb[40].mxu1  ;;  %3145 = vmatpush3.bf16.msra.mxu1 %v3612_v17 }
 0x451   : > { %v1976_v42 = vadd.f32 %v3104_v40, %v2875_v5  ;;  %v1967_v43 = vpop.f32.mrb[41].mxu1  ;;  %3146 = vmatprep.subr.bf16.mxu1 %v3613_v6  ;;  %p3854_p6 = por %p3853_p8, %p3852_p13 }
 0x452   : > { %v1968_v45 = vadd.f32 %v2875_v5, %v1967_v43  ;;  %v3105_v53 = vpop.f32.mrb[42].mxu1  ;;  %3130 = vmatprep.mubr.bf16.mxu1 %v2016_v39 }
 0x453   : > { %v1979_v54 = vadd.f32 %v3105_v53, %v2875_v5  ;;  %v1970_v55 = vpop.f32.mrb[43].mxu1  ;;  %3131 = vmatmul.mubr.bf16.gmra.mrb[52].mxu1 %v2017_v38  ;;  %v2008_v57 = vmax.f32 %v1976_v42, 0.0  ;;  %p3855_p9 = pnand %p3854_p6, %p3848_p12 }
 0x454   : > { %v1971_v56 = vadd.f32 %v2875_v5, %v1970_v55  ;;  %v2006_v59 = vmax.f32 %v1968_v45, 0.0  ;;  %3147 = vmatpush3.bf16.msra.mxu1 %v3613_v6 }
 0x455   : > { %v2009_v58 = vmax.f32 %v1979_v54, 0.0  ;;  %3148 = vmatprep.subr.bf16.mxu1 %v3614_v18 }
 0x456   : > { %v2007_v0 = vmax.f32 %v1971_v56, 0.0 }
 0x457   : > { %v2019_v1 = vpack.c.bf16 %v2009_v58, %v2008_v57 }
 0x458   : > { %v2018_v2 = vpack.c.bf16 %v2007_v0, %v2006_v59  ;;  %v3108_v3 = vpop.f32.mrb[44].mxu1  ;;  %3149 = vmatpush3.bf16.msra.mxu1 %v3614_v18 }
 0x459   : > { %v1992_v4 = vadd.f32 %v3108_v3, %v2875_v5  ;;  %v1983_v12 = vpop.f32.mrb[45].mxu1 }
 0x45a   : > { %v1984_v28 = vadd.f32 %v2875_v5, %v1983_v12  ;;  %v3109_v44 = vpop.f32.mrb[46].mxu1  ;;  %3134 = vmatprep.mubr.bf16.mxu1 %v2018_v2 }
 0x45b   : > { %v1995_v60 = vadd.f32 %v3109_v44, %v2875_v5  ;;  %v1986_v11 = vpop.f32.mrb[47].mxu1  ;;  %3135 = vmatmul.mubr.bf16.gmra.mrb[56].mxu1 %v2019_v1  ;;  %v2012_v41 = vmax.f32 %v1992_v4, 0.0 }
 0x45c   : > { %v1987_v26 = vadd.f32 %v2875_v5, %v1986_v11  ;;  %v2010_v10 = vmax.f32 %v1984_v28, 0.0  ;;  %v3615_v5 = vld [vmem:[#allocation14 + $0x20] sm:$0xff]  }
 0x45d   : > { %v2013_v9 = vmax.f32 %v1995_v60, 0.0  ;;  %3150 = vmatprep.subr.bf16.mxu1 %v3615_v5 }
 0x45e   : > { %v2011_v13 = vmax.f32 %v1987_v26, 0.0  ;;  %3151 = vmatpush3.bf16.msra.mxu1 %v3615_v5 }
 0x45f   : > { %v2021_v14 = vpack.c.bf16 %v2013_v9, %v2012_v41  ;;  %3152 = vmatprep.subr.bf16.mxu1 %v3616_v19 }
 0x460   : > { %v2020_v15 = vpack.c.bf16 %v2011_v13, %v2010_v10 }
 0x462   : > { %3138 = vmatprep.mubr.bf16.mxu1 %v2020_v15  ;;  %3153 = vmatpush3.bf16.msra.mxu1 %v3616_v19 }
 0x463   : > { %3139 = vmatmul.mubr.bf16.gmra.mrb[60].mxu1 %v2021_v14  ;;  %3154 = vmatprep.subr.bf16.mxu1 %v3617_v20 }
 0x466   : > { %3155 = vmatpush3.bf16.msra.mxu1 %v3617_v20 }
 0x467   : > { %3156 = vmatprep.subr.bf16.mxu1 %v3618_v21 }
 0x46a   : > { %3157 = vmatpush3.bf16.msra.mxu1 %v3618_v21 }
 0x46b   : > { %3206 = vmatprep.subr.bf16.mxu1 %v4415_v46 }
 0x4e6   : > { %v4491_v22 = vpop.f32.mrb[32].mxu0 }
 0x4e7   : > { %v4493_v23 = vpop.f32.mrb[33].mxu0 }
 0x4e8   : > { %v4495_v24 = vpop.f32.mrb[34].mxu0 }
 0x4e9   : > { %v4497_v25 = vpop.f32.mrb[35].mxu0 }
 0x4f6   : > { %v4499_v27 = vpop.f32.mrb[36].mxu0 }
 0x4f7   : > { %v4501_v29 = vpop.f32.mrb[37].mxu0 }
 0x4f8   : > { %v4503_v30 = vpop.f32.mrb[38].mxu0 }
 0x4f9   : > { %v4505_v31 = vpop.f32.mrb[39].mxu0 }
 0x51e   : > { %v3128_v33 = vpop.f32.mrb[48].mxu1 }
 0x51f   : > { %v2136_v34 = vadd.f32 %v3128_v33, %v4510_v32  ;;  %v2127_v35 = vpop.f32.mrb[49].mxu1 }
 0x520   : > { %v2128_v36 = vadd.f32 %v4510_v32, %v2127_v35  ;;  %v3129_v37 = vpop.f32.mrb[50].mxu1 }
 0x521   : > { %v2139_v38 = vadd.f32 %v3129_v37, %v4510_v32  ;;  %v2130_v39 = vpop.f32.mrb[51].mxu1  ;;  %v2192_v42 = vmax.f32 %v2136_v34, 0.0 }
 0x522   : > { %v2131_v40 = vadd.f32 %v4510_v32, %v2130_v39  ;;  %v2190_v45 = vmax.f32 %v2128_v36, 0.0 }
 0x523   : > { %v2193_v43 = vmax.f32 %v2139_v38, 0.0 }
 0x524   : > { %v2191_v53 = vmax.f32 %v2131_v40, 0.0 }
 0x525   : > { %v2231_v54 = vpack.c.bf16 %v2193_v43, %v2192_v42 }
 0x526   : > { %v2230_v55 = vpack.c.bf16 %v2191_v53, %v2190_v45  ;;  %v3132_v56 = vpop.f32.mrb[52].mxu1 }
 0x527   : > { %v2152_v57 = vadd.f32 %v3132_v56, %v4510_v32  ;;  %v2143_v58 = vpop.f32.mrb[53].mxu1 }
 0x528   : > { %v2144_v59 = vadd.f32 %v4510_v32, %v2143_v58  ;;  %v3133_v0 = vpop.f32.mrb[54].mxu1  ;;  %3158 = vmatprep.mubr.bf16.mxu1 %v2230_v55 }
 0x529   : > { %v2155_v1 = vadd.f32 %v3133_v0, %v4510_v32  ;;  %v2146_v2 = vpop.f32.mrb[55].mxu1  ;;  %3159 = vmatmul.mubr.bf16.vlgmr.msra.gmra.mrb[64].mxu1 %v2231_v54  ;;  %v2196_v4 = vmax.f32 %v2152_v57, 0.0 }
 0x52a   : > { %v2147_v3 = vadd.f32 %v4510_v32, %v2146_v2  ;;  %3214 = vmatpush3.bf16.msra.mxu1 %v4415_v46  ;;  %v2194_v28 = vmax.f32 %v2144_v59, 0.0 }
 0x52b   : > { %v2197_v12 = vmax.f32 %v2155_v1, 0.0  ;;  %3207 = vmatprep.subr.bf16.mxu1 %v4417_v48 }
 0x52c   : > { %v2195_v44 = vmax.f32 %v2147_v3, 0.0 }
 0x52d   : > { %v2233_v60 = vpack.c.bf16 %v2197_v12, %v2196_v4 }
 0x52e   : > { %v2232_v11 = vpack.c.bf16 %v2195_v44, %v2194_v28  ;;  %v3136_v26 = vpop.f32.mrb[56].mxu1  ;;  %3215 = vmatpush3.bf16.msra.mxu1 %v4417_v48 }
 0x52f   : > { %v2168_v41 = vadd.f32 %v3136_v26, %v4510_v32  ;;  %v2159_v9 = vpop.f32.mrb[57].mxu1  ;;  %3208 = vmatprep.subr.bf16.mxu1 %v4422_v47 }
 0x530   : > { %v2160_v10 = vadd.f32 %v4510_v32, %v2159_v9  ;;  %v3137_v13 = vpop.f32.mrb[58].mxu1  ;;  %3162 = vmatprep.mubr.bf16.mxu1 %v2232_v11 }
 0x531   : > { %v2171_v46 = vadd.f32 %v3137_v13, %v4510_v32  ;;  %v2162_v14 = vpop.f32.mrb[59].mxu1  ;;  %3163 = vmatmul.mubr.bf16.gmra.mrb[68].mxu1 %v2233_v60  ;;  %v2200_v16 = vmax.f32 %v2168_v41, 0.0 }
 0x532   : > { %v2163_v15 = vadd.f32 %v4510_v32, %v2162_v14  ;;  %3216 = vmatpush3.bf16.msra.mxu1 %v4422_v47  ;;  %v2198_v48 = vmax.f32 %v2160_v10, 0.0 }
 0x533   : > { %v2201_v17 = vmax.f32 %v2171_v46, 0.0  ;;  %3209 = vmatprep.subr.bf16.mxu1 %v4426_v49 }
 0x534   : > { %v2199_v6 = vmax.f32 %v2163_v15, 0.0 }
 0x535   : > { %v2235_v18 = vpack.c.bf16 %v2201_v17, %v2200_v16 }
 0x536   : > { %v2234_v5 = vpack.c.bf16 %v2199_v6, %v2198_v48  ;;  %v3140_v19 = vpop.f32.mrb[60].mxu1  ;;  %3217 = vmatpush3.bf16.msra.mxu1 %v4426_v49 }
 0x537   : > { %v2184_v20 = vadd.f32 %v3140_v19, %v4510_v32  ;;  %v2175_v21 = vpop.f32.mrb[61].mxu1  ;;  %3210 = vmatprep.subr.bf16.mxu1 %v4430_v50 }
 0x538   : > { %v2176_v33 = vadd.f32 %v4510_v32, %v2175_v21  ;;  %v3141_v34 = vpop.f32.mrb[62].mxu1  ;;  %3166 = vmatprep.mubr.bf16.mxu1 %v2234_v5 }
 0x539   : > { %v2187_v47 = vadd.f32 %v3141_v34, %v4510_v32  ;;  %v2178_v35 = vpop.f32.mrb[63].mxu1  ;;  %3167 = vmatmul.mubr.bf16.gmra.mrb[72].mxu1 %v2235_v18  ;;  %v2204_v37 = vmax.f32 %v2184_v20, 0.0 }
 0x53a   : > { %v2179_v36 = vadd.f32 %v4510_v32, %v2178_v35  ;;  %3218 = vmatpush3.bf16.msra.mxu1 %v4430_v50  ;;  %v2202_v49 = vmax.f32 %v2176_v33, 0.0 }
 0x53b   : > { %v2205_v38 = vmax.f32 %v2187_v47, 0.0  ;;  %3211 = vmatprep.subr.bf16.mxu1 %v4434_v51 }
 0x53c   : > { %v2203_v39 = vmax.f32 %v2179_v36, 0.0 }
 0x53d   : > { %v2237_v40 = vpack.c.bf16 %v2205_v38, %v2204_v37 }
 0x53e   : > { %v2236_v42 = vpack.c.bf16 %v2203_v39, %v2202_v49  ;;  %3219 = vmatpush3.bf16.msra.mxu1 %v4434_v51  ;;  %v2909_v51 = vld [vmem:[%s4676_s28] ss:$0 sm:$0xff] }
 0x53f   : > { %3212 = vmatprep.subr.bf16.mxu1 %v4468_v52 }
 0x540   : > { %3170 = vmatprep.mubr.bf16.mxu1 %v2236_v42 }
 0x541   : > { %3171 = vmatmul.mubr.bf16.gmra.mrb[76].mxu1 %v2237_v40 }
 0x542   : > { %3220 = vmatpush3.bf16.msra.mxu1 %v4468_v52  ;;  %3198 = vmatprep.mubr.bf16.mxu1 %v4481_v63 }
 0x543   : > { %3213 = vmatprep.subr.bf16.mxu1 %v4472_v61 }
 0x546   : > { %3221 = vmatpush3.bf16.msra.mxu1 %v4472_v61 }
 0x549   : > { %3199 = vmatmul.mubr.bf16.vlgmr.msra.gmra.mrb[72].mxu1 %v4479_v62 }
 0x54a   : > { %3202 = vmatprep.mubr.bf16.mxu1 %v4488_v8 }
 0x551   : > { %3203 = vmatmul.mubr.bf16.gmra.mrb[76].mxu1 %v4486_v7 }
 0x5fc   : > { %v3160_v50 = vpop.f32.mrb[64].mxu1 }
 0x5fd   : > { %v2490_v52 = vadd.f32 %v4491_v22, %v3160_v50  ;;  %v2336_v32 = vpop.f32.mrb[65].mxu1 }
 0x5fe   : > { %v2482_v63 = vadd.f32 %v4493_v23, %v2336_v32  ;;  %v3161_v43 = vpop.f32.mrb[66].mxu1 }
 0x5ff   : > { %v2553_v45 = vadd.f32 %v2909_v51, %v2490_v52  ;;  %v2493_v61 = vadd.f32 %v4495_v24, %v3161_v43  ;;  %v2339_v62 = vpop.f32.mrb[67].mxu1 }
 0x600   : > { %v2551_v53 = vadd.f32 %v2909_v51, %v2482_v63  ;;  %v2485_v8 = vadd.f32 %v4497_v25, %v2339_v62 }
 0x601   : > { %2569 = vst [vmem:[%s4555_s13 + $0x10] sm:$0xff] %v2553_v45  ;;  %v2554_v7 = vadd.f32 %v2909_v51, %v2493_v61 }
 0x602   : > { %2567 = vst [vmem:[%s4555_s13] sm:$0xff] %v2551_v53  ;;  %v2552_v22 = vadd.f32 %v2909_v51, %v2485_v8 }
 0x603   : > { %2570 = vst [vmem:[%s4555_s13 + $0x18] sm:$0xff] %v2554_v7 }
 0x604   : > { %2568 = vst [vmem:[%s4555_s13 + $0x8] sm:$0xff] %v2552_v22  ;;  %v3164_v23 = vpop.f32.mrb[68].mxu1 }
 0x605   : > { %v2506_v24 = vadd.f32 %v4499_v27, %v3164_v23  ;;  %v2352_v25 = vpop.f32.mrb[69].mxu1 }
 0x606   : > { %v2498_v54 = vadd.f32 %v4501_v29, %v2352_v25  ;;  %v3165_v55 = vpop.f32.mrb[70].mxu1 }
 0x607   : > { %v2557_v56 = vadd.f32 %v2909_v51, %v2506_v24  ;;  %v2509_v57 = vadd.f32 %v4503_v30, %v3165_v55  ;;  %v2355_v58 = vpop.f32.mrb[71].mxu1 }
 0x608   : > { %v2555_v59 = vadd.f32 %v2909_v51, %v2498_v54  ;;  %v2501_v0 = vadd.f32 %v4505_v31, %v2355_v58 }
 0x609   : > { %2573 = vst [vmem:[%s4555_s13 + $0x30] sm:$0xff] %v2557_v56  ;;  %v2558_v1 = vadd.f32 %v2909_v51, %v2509_v57 }
 0x60a   : > { %2571 = vst [vmem:[%s4555_s13 + $0x20] sm:$0xff] %v2555_v59  ;;  %v2556_v2 = vadd.f32 %v2909_v51, %v2501_v0 }
 0x60b   : > { %2574 = vst [vmem:[%s4555_s13 + $0x38] sm:$0xff] %v2558_v1 }
 0x60c   : > { %2572 = vst [vmem:[%s4555_s13 + $0x28] sm:$0xff] %v2556_v2 }
 0x61c   : > { %v3200_v27 = vpop.f32.mrb[72].mxu1 }
 0x61d   : > { %v2561_v29 = vadd.f32 %v3200_v27, %v2909_v51  ;;  %v2513_v3 = vpop.f32.mrb[73].mxu1 }
 0x61e   : > { %v2559_v4 = vadd.f32 %v2909_v51, %v2513_v3  ;;  %v3201_v30 = vpop.f32.mrb[74].mxu1 }
 0x61f   : > { %2577 = vst [vmem:[%s4555_s13 + $0x50] sm:$0xff] %v2561_v29  ;;  %v2562_v12 = vadd.f32 %v3201_v30, %v2909_v51  ;;  %v2516_v28 = vpop.f32.mrb[75].mxu1 }
 0x620   : > { %2575 = vst [vmem:[%s4555_s13 + $0x40] sm:$0xff] %v2559_v4  ;;  %v2560_v31 = vadd.f32 %v2909_v51, %v2516_v28 }
 0x621   : > { %2578 = vst [vmem:[%s4555_s13 + $0x58] sm:$0xff] %v2562_v12 }
 0x622   : > { %2576 = vst [vmem:[%s4555_s13 + $0x48] sm:$0xff] %v2560_v31 }
 0x624   : > { %v3204_v44 = vpop.f32.mrb[76].mxu1 }
 0x625   : > { %v2565_v60 = vadd.f32 %v3204_v44, %v2909_v51  ;;  %v2529_v11 = vpop.f32.mrb[77].mxu1 }
 0x626   : > { %v2563_v26 = vadd.f32 %v2909_v51, %v2529_v11  ;;  %v3205_v41 = vpop.f32.mrb[78].mxu1 }
 0x627   : > { %2581 = vst [vmem:[%s4555_s13 + $0x70] sm:$0xff] %v2565_v60  ;;  %v2566_v9 = vadd.f32 %v3205_v41, %v2909_v51  ;;  %v2532_v10 = vpop.f32.mrb[79].mxu1 }
 0x628   : > { %2579 = vst [vmem:[%s4555_s13 + $0x60] sm:$0xff] %v2563_v26  ;;  %v2564_v13 = vadd.f32 %v2909_v51, %v2532_v10 }
 0x629   : > { %2582 = vst [vmem:[%s4555_s13 + $0x78] sm:$0xff] %v2566_v9 }
 0x62a   : > { %2580 = vst [vmem:[%s4555_s13 + $0x68] sm:$0xff] %v2564_v13 }
 0x62b   : > { %3858 = shalt.err (!%p3855_p9)
}
 0x62c   : > { %s3859_s8 = scalar_lea.hbm %s4579_s4, 2048  ;;  %s3863_s1 = scalar_lea.hbm %s4677_s18, 4096 }
 0x62d   : > { %p3860_p4 = scmp.ne.s32.totalorder %s4579_s4, %s3859_s8  ;;  %p3864_p5 = scmp.lt.u32.totalorder %s4579_s4, %s4677_s18 }
 0x62e   : > { %p3865_p2 = scmp.lt.u32.totalorder %s3863_s1, %s3859_s8  ;;  %p3867_p10 = scmp.lt.u32.totalorder %s3859_s8, %s4579_s4 }
 0x62f   : > { %p3861_p3 = pnand %p3860_p4, %p4678_p1 }
 0x630   : > { %p3866_p7 = por %p3865_p2, %p3864_p5 }
 0x631   : > { %p3862_p0 = pneg %p3861_p3 }
 0x632   : > { %p3868_p11 = por %p3867_p10, %p3866_p7 }
 0x634   : > { %p3869_p12 = pnand %p3868_p11, %p3862_p0 }
 0x636   : > { %3872 = shalt.err (!%p3869_p12)
}
 0x637   : > { %s3944_s26 = smov 128   ;;  %s3945_s20 = smov 8  }
 0x638   : > { %3332 = dma.vmem_to_hbm [thread:$0]  (%p4678_p1), %s4581_s22, 2048, %s4579_s4, %s2584_s19, %s3944_s26, %s3944_s26, %s3945_s20  }
 0x639 PF: > { %s2612_s17 = sand.u32 1, %s3915_s29   ;;  %p4679_p13 = scmp.ne.s32.totalorder %s4661_s27, 0 }
 0x63a   : > { %p4680_p8 = scmp.ge.s32.totalorder %s3927_s16, 2  ;;  %s2613_s23 = scalar_lea.sflag [#allocation4], %s2612_s17 }
 0x63c   : > { %p3361_p6 = pnand %p4680_p8, %p4679_p13 }
 0x63e   : > { %3910 = dma.done.wait (!%p3361_p6), %s2613_s23, 2048  }
 0x63f   : > { %3912 = vsyncadd (!%p3361_p6), %s2613_s23, 4294965248  ;;  %p31_p9 = scmp.ge.s32.totalorder %s4229_s21, 4   ;;  %s4681_s29 = smov %s3919_s30 }
 0x640   : > { %s4682_s30 = smov %s3923_s15  ;;  %s4683_s15 = smov %s4241_s10 }
 0x641   : > { %s4684_s16 = smov %s4229_s21  ;;  %33 = sbr.rel (!%p31_p9) target bundleno = 17 (0x11), region = 149 }
 0x648   :  { %2618 = vsyncpa [#allocation3], 1 }
 0x649   :  { %2620 = vsyncpa [#allocation3 + $0x1], 1 }
 0x64a   :  { %2621 = vsyncpa [#allocation6], 1 }
 0x64b   :  { %2622 = vsyncpa [#allocation9], 1 }
 0x64c   :  { %2623 = vsyncpa [#allocation12], 1 }
 0x64d   :  { %2624 = vsyncpa [#allocation15], 1 }
 0x64e   :  { %2625 = vsyncpa [#allocation4], 1 }
 0x64f   :  { %2627 = vsyncpa [#allocation4 + $0x1], 1 }

</bundles_post_ra>
